<compile_context>
chip_gen: v5e
topology: v5e:2x2
jax: 0.10.0
libtpu: 0.0.40
codegen_flags: <defaults>
</compile_context>

<pallas_src>
import math

import jax
import jax.numpy as jnp
from jax.experimental import pallas as pl
from jax.experimental.pallas import tpu as pltpu

EPS = 0.003
LANE = 128


def _round_up(x, m):
    return ((x + m - 1) // m) * m


def critic_kernel(x_ref,                       # (in_pad, TILE_B) bf16  [state;action]
                  wsa_ref, bsa_ref,            # fused fcs1+fca1: (384, in_pad), (384, 1)
                  w2_ref, b2_ref,              # fcs2: 256 -> 128
                  w3s_ref, w3a_ref, b3_ref,    # fc2 : 256 -> 128 (split 128/128)
                  w4_ref, b4_ref,              # fc3 : 128 -> 1
                  out_ref):                    # (1, TILE_B) f32
    bf16 = jnp.bfloat16
    f32 = jnp.float32

    x = x_ref[...]                                           # (in_pad, TB) bf16

    # [s1; a1] = relu(Wsa @ [xs; xa] + [b1; ba])  -- block-diagonal fused matmul
    y = jnp.dot(wsa_ref[...], x, preferred_element_type=f32) + bsa_ref[...]
    y = jnp.maximum(y, 0.0)                                  # (384, TB) f32
    s1 = y[:256].astype(bf16)                                # (256, TB)
    a1 = y[256:].astype(bf16)                                # (128, TB)

    # s2 = relu(W2 @ s1 + b2)
    s2 = jnp.dot(w2_ref[...], s1, preferred_element_type=f32) + b2_ref[...]
    s2 = jnp.maximum(s2, 0.0)                                # (128, TB) f32

    # h = relu(W3 @ cat(s2, a1) + b3) == relu(W3s @ s2 + W3a @ a1 + b3)
    h = (jnp.dot(w3s_ref[...], s2.astype(bf16), preferred_element_type=f32)
         + jnp.dot(w3a_ref[...], a1, preferred_element_type=f32)
         + b3_ref[...])
    h = jnp.maximum(h, 0.0)                                  # (128, TB) f32

    # q = w4 . h + b4 : VPU multiply + sublane (XLU) reduce, lane-dense output.
    q = jnp.sum(h * w4_ref[...], axis=0, keepdims=True) + b4_ref[...]  # (1, TB)
    out_ref[...] = q.astype(out_ref.dtype)


def critic_forward(state, action, params, *, tile_b=None, interpret=False):
    """state: (n, state_dim) f32, action: (n, action_dim) f32 -> Q: (n, 1) f32.

    `params` holds raw PyTorch-layout weights (out_features, in_features) and
    1-D biases; all kernel-layout packing is done here (layout plumbing only).
    """
    n, state_dim = state.shape
    action_dim = action.shape[1]
    s_pad = _round_up(state_dim, 8)
    a_pad = _round_up(action_dim, 8)
    in_pad = s_pad + a_pad

    if tile_b is None:
        tile_b = min(1024, _round_up(n, LANE))
    tile_b = _round_up(tile_b, LANE)
    n_pad = _round_up(n, tile_b)
    grid = (n_pad // tile_b,)

    bf16, f32 = jnp.bfloat16, jnp.float32

    # Lane-dense layout plumbing: batch on the lane axis, state+action stacked
    # (with zero padding to sublane multiples) into a single input stream.
    xsa = jnp.zeros((in_pad, n_pad), bf16)
    xsa = xsa.at[:state_dim, :n].set(state.T.astype(bf16))
    xsa = xsa.at[s_pad:s_pad + action_dim, :n].set(action.T.astype(bf16))

    # Fused block-diagonal first layer: rows 0:256 <- fcs1, rows 256:384 <- fca1.
    w_sa = jnp.zeros((384, in_pad), f32)
    w_sa = w_sa.at[:256, :state_dim].set(params["w1"])
    w_sa = w_sa.at[256:, s_pad:s_pad + action_dim].set(params["wa"])
    b_sa = jnp.concatenate([params["b1"], params["ba"]]).reshape(384, 1)

    w3 = params["w3"]
    args = (xsa,
            w_sa.astype(bf16), b_sa,
            params["w2"].astype(bf16), params["b2"].reshape(128, 1),
            w3[:, :128].astype(bf16), w3[:, 128:].astype(bf16),
            params["b3"].reshape(128, 1),
            params["w4"].T.astype(f32),          # (128, 1), used on VPU/XLU
            params["b4"].reshape(1, 1))

    def resident(x):
        # Whole (tiny) weight/bias as one block; constant block index keeps it
        # VMEM-resident across every grid step (no re-DMA).
        nd = x.ndim
        return pl.BlockSpec(x.shape, lambda i, nd=nd: (0,) * nd)

    in_specs = [pl.BlockSpec((in_pad, tile_b), lambda i: (0, i))] + \
               [resident(a) for a in args[1:]]

    flops = 2 * n_pad * (in_pad * 384 + 256 * 128 + 2 * 128 * 128 + 128)
    bytes_accessed = int(sum(int(a.size) * a.dtype.itemsize for a in args)
                         + n_pad * 4)
    cost = pl.CostEstimate(flops=int(flops), transcendentals=0,
                           bytes_accessed=bytes_accessed)

    q = pl.pallas_call(
        critic_kernel,
        out_shape=jax.ShapeDtypeStruct((1, n_pad), jnp.float32),
        grid_spec=pl.GridSpec(
            grid=grid,
            in_specs=in_specs,
            out_specs=pl.BlockSpec((1, tile_b), lambda i: (0, i)),
        ),
        compiler_params=pltpu.CompilerParams(
            dimension_semantics=("parallel",),        # v7x megacore split
            vmem_limit_bytes=32 * 1024 * 1024),       # portable VMEM budget
        cost_estimate=cost,
        interpret=interpret,
    )(*args)

    return q[:, :n].T  # (n, 1) float32


def init_params(key, state_dim, action_dim):
    """PyTorch-faithful init, stored raw in PyTorch layout (out_f, in_f) f32.
    fanin_init in the torch code uses fanin = weight.size(0) = out_features;
    biases keep the nn.Linear default U(-1/sqrt(in_f), 1/sqrt(in_f))."""
    ks = jax.random.split(key, 10)
    f32 = jnp.float32

    def uni(k, shape, bound):
        return jax.random.uniform(k, shape, f32, -bound, bound)

    return {
        "w1": uni(ks[0], (256, state_dim), 1.0 / math.sqrt(256.0)),   # fcs1
        "b1": uni(ks[1], (256,), 1.0 / math.sqrt(float(state_dim))),
        "w2": uni(ks[2], (128, 256), 1.0 / math.sqrt(128.0)),         # fcs2
        "b2": uni(ks[3], (128,), 1.0 / math.sqrt(256.0)),
        "wa": uni(ks[4], (128, action_dim), 1.0 / math.sqrt(128.0)),  # fca1
        "ba": uni(ks[5], (128,), 1.0 / math.sqrt(float(action_dim))),
        "w3": uni(ks[6], (128, 256), 1.0 / math.sqrt(128.0)),         # fc2
        "b3": uni(ks[7], (128,), 1.0 / math.sqrt(256.0)),
        "w4": uni(ks[8], (1, 128), EPS),                              # fc3
        "b4": uni(ks[9], (1,), 1.0 / math.sqrt(128.0)),
    }


def reference_forward(state, action, params):
    """Plain-JAX (XLA) reference following the PyTorch module structure, with
    the same dtype discipline as the kernel (bf16 matmuls, f32 accumulate,
    final fc3 layer in f32)."""
    bf16, f32 = jnp.bfloat16, jnp.float32

    def lin_bf16(x, w, b):
        return jnp.dot(x.astype(bf16), w.T.astype(bf16),
                       preferred_element_type=f32) + b

    s1 = jax.nn.relu(lin_bf16(state, params["w1"], params["b1"]))
    s2 = jax.nn.relu(lin_bf16(s1, params["w2"], params["b2"]))
    a1 = jax.nn.relu(lin_bf16(action, params["wa"], params["ba"]))
    x = jnp.concatenate([s2, a1], axis=1)
    x = jax.nn.relu(lin_bf16(x, params["w3"], params["b3"]))
    q = jnp.dot(x, params["w4"].T,
                preferred_element_type=f32) + params["b4"]
    return q  # (n, 1)


if __name__ == "__main__":
    key = jax.random.PRNGKey(0)
    k_param, k_s1, k_a1, k_s2, k_a2 = jax.random.split(key, 5)

    batch, state_dim, action_dim = 8, 16, 4
    params = init_params(k_param, state_dim, action_dim)

    # Small demo batch (single grid step).
    state = jax.random.normal(k_s1, (batch, state_dim), jnp.float32)
    action = jax.random.normal(k_a1, (batch, action_dim), jnp.float32)
    q = critic_forward(state, action, params)
    jax.block_until_ready(q)
    q_ref = reference_forward(state, action, params)
    assert q.shape == (batch, 1)
    assert jnp.allclose(q, q_ref, atol=1e-3, rtol=1e-2), float(
        jnp.max(jnp.abs(q - q_ref)))

    # Multi-tile grid + batch padding path (n not a multiple of the tile).
    n2 = 300
    state2 = jax.random.normal(k_s2, (n2, state_dim), jnp.float32)
    action2 = jax.random.normal(k_a2, (n2, action_dim), jnp.float32)
    q2 = critic_forward(state2, action2, params, tile_b=128)
    jax.block_until_ready(q2)
    q2_ref = reference_forward(state2, action2, params)
    assert q2.shape == (n2, 1)
    assert jnp.allclose(q2, q2_ref, atol=1e-3, rtol=1e-2), float(
        jnp.max(jnp.abs(q2 - q2_ref)))

    print("KERNEL_OK")
</pallas_src>

<mosaic_0001>
module attributes {stable_mosaic.version = 11 : i64} {
  func.func @critic_kernel(%arg0: i32, %arg1: memref<24x128xbf16, #tpu.memory_space<vmem>>, %arg2: memref<384x24xbf16, #tpu.memory_space<vmem>>, %arg3: memref<384x1xf32, #tpu.memory_space<vmem>>, %arg4: memref<128x256xbf16, #tpu.memory_space<vmem>>, %arg5: memref<128x1xf32, #tpu.memory_space<vmem>>, %arg6: memref<128x128xbf16, #tpu.memory_space<vmem>>, %arg7: memref<128x128xbf16, #tpu.memory_space<vmem>>, %arg8: memref<128x1xf32, #tpu.memory_space<vmem>>, %arg9: memref<128x1xf32, #tpu.memory_space<vmem>>, %arg10: memref<1x1xf32, #tpu.memory_space<vmem>>, %arg11: memref<1x128xf32, #tpu.memory_space<vmem>>) attributes {dimension_semantics = [#tpu.dimension_semantics<parallel>], iteration_bounds = array<i64: 1>, scalar_prefetch = 0 : i64, scratch_operands = 0 : i64, tpu.core_type = #tpu.core_type<tc>, window_params = [{transform_indices = @transform_0, window_bounds = array<i64: 24, 128>}, {pipeline_mode = #tpu.pipeline_mode<synchronous>, transform_indices = @transform_1, window_bounds = array<i64: 384, 24>}, {pipeline_mode = #tpu.pipeline_mode<synchronous>, transform_indices = @transform_2, window_bounds = array<i64: 384, 1>}, {pipeline_mode = #tpu.pipeline_mode<synchronous>, transform_indices = @transform_3, window_bounds = array<i64: 128, 256>}, {pipeline_mode = #tpu.pipeline_mode<synchronous>, transform_indices = @transform_4, window_bounds = array<i64: 128, 1>}, {pipeline_mode = #tpu.pipeline_mode<synchronous>, transform_indices = @transform_5, window_bounds = array<i64: 128, 128>}, {pipeline_mode = #tpu.pipeline_mode<synchronous>, transform_indices = @transform_6, window_bounds = array<i64: 128, 128>}, {pipeline_mode = #tpu.pipeline_mode<synchronous>, transform_indices = @transform_7, window_bounds = array<i64: 128, 1>}, {pipeline_mode = #tpu.pipeline_mode<synchronous>, transform_indices = @transform_8, window_bounds = array<i64: 128, 1>}, {pipeline_mode = #tpu.pipeline_mode<synchronous>, transform_indices = @transform_9, window_bounds = array<i64: 1, 1>}, {transform_indices = @transform_10, window_bounds = array<i64: 1, 128>}]} {
    %c0 = arith.constant 0 : index
    %c0_0 = arith.constant 0 : index
    %0 = vector.load %arg1[%c0, %c0_0] : memref<24x128xbf16, #tpu.memory_space<vmem>>, vector<24x128xbf16>
    %c0_1 = arith.constant 0 : index
    %c0_2 = arith.constant 0 : index
    %1 = vector.load %arg2[%c0_1, %c0_2] : memref<384x24xbf16, #tpu.memory_space<vmem>>, vector<384x24xbf16>
    %cst = arith.constant dense<0.000000e+00> : vector<384x128xf32>
    %2 = tpu.matmul %1, %0, %cst {dimension_numbers = #tpu.dot_dimension_numbers<[1], [0], [0], [1], [0, 0, 1, 1], [], []>} : vector<384x24xbf16>, vector<24x128xbf16>, vector<384x128xf32> -> vector<384x128xf32>
    %c0_3 = arith.constant 0 : index
    %c0_4 = arith.constant 0 : index
    %3 = vector.load %arg3[%c0_3, %c0_4] : memref<384x1xf32, #tpu.memory_space<vmem>>, vector<384x1xf32>
    %4 = vector.broadcast %3 : vector<384x1xf32> to vector<384x128xf32>
    %5 = arith.addf %2, %4 : vector<384x128xf32>
    %cst_5 = arith.constant 0.000000e+00 : f32
    %6 = vector.broadcast %cst_5 : f32 to vector<384x128xf32>
    %7 = arith.maximumf %5, %6 : vector<384x128xf32>
    %8 = vector.extract_strided_slice %7 {offsets = [0, 0], sizes = [256, 128], strides = [1, 1]} : vector<384x128xf32> to vector<256x128xf32>
    %9 = arith.truncf %8 : vector<256x128xf32> to vector<256x128xbf16>
    %10 = vector.extract_strided_slice %7 {offsets = [256, 0], sizes = [128, 128], strides = [1, 1]} : vector<384x128xf32> to vector<128x128xf32>
    %11 = arith.truncf %10 : vector<128x128xf32> to vector<128x128xbf16>
    %c0_6 = arith.constant 0 : index
    %c0_7 = arith.constant 0 : index
    %12 = vector.load %arg4[%c0_6, %c0_7] : memref<128x256xbf16, #tpu.memory_space<vmem>>, vector<128x256xbf16>
    %cst_8 = arith.constant dense<0.000000e+00> : vector<128x128xf32>
    %13 = tpu.matmul %12, %9, %cst_8 {dimension_numbers = #tpu.dot_dimension_numbers<[1], [0], [0], [1], [0, 0, 1, 1], [], []>} : vector<128x256xbf16>, vector<256x128xbf16>, vector<128x128xf32> -> vector<128x128xf32>
    %c0_9 = arith.constant 0 : index
    %c0_10 = arith.constant 0 : index
    %14 = vector.load %arg5[%c0_9, %c0_10] : memref<128x1xf32, #tpu.memory_space<vmem>>, vector<128x1xf32>
    %15 = vector.broadcast %14 : vector<128x1xf32> to vector<128x128xf32>
    %16 = arith.addf %13, %15 : vector<128x128xf32>
    %cst_11 = arith.constant 0.000000e+00 : f32
    %17 = vector.broadcast %cst_11 : f32 to vector<128x128xf32>
    %18 = arith.maximumf %16, %17 : vector<128x128xf32>
    %c0_12 = arith.constant 0 : index
    %c0_13 = arith.constant 0 : index
    %19 = vector.load %arg6[%c0_12, %c0_13] : memref<128x128xbf16, #tpu.memory_space<vmem>>, vector<128x128xbf16>
    %20 = arith.truncf %18 : vector<128x128xf32> to vector<128x128xbf16>
    %cst_14 = arith.constant dense<0.000000e+00> : vector<128x128xf32>
    %21 = tpu.matmul %19, %20, %cst_14 {dimension_numbers = #tpu.dot_dimension_numbers<[1], [0], [0], [1], [0, 0, 1, 1], [], []>} : vector<128x128xbf16>, vector<128x128xbf16>, vector<128x128xf32> -> vector<128x128xf32>
    %c0_15 = arith.constant 0 : index
    %c0_16 = arith.constant 0 : index
    %22 = vector.load %arg7[%c0_15, %c0_16] : memref<128x128xbf16, #tpu.memory_space<vmem>>, vector<128x128xbf16>
    %cst_17 = arith.constant dense<0.000000e+00> : vector<128x128xf32>
    %23 = tpu.matmul %22, %11, %cst_17 {dimension_numbers = #tpu.dot_dimension_numbers<[1], [0], [0], [1], [0, 0, 1, 1], [], []>} : vector<128x128xbf16>, vector<128x128xbf16>, vector<128x128xf32> -> vector<128x128xf32>
    %24 = arith.addf %21, %23 : vector<128x128xf32>
    %c0_18 = arith.constant 0 : index
    %c0_19 = arith.constant 0 : index
    %25 = vector.load %arg8[%c0_18, %c0_19] : memref<128x1xf32, #tpu.memory_space<vmem>>, vector<128x1xf32>
    %26 = vector.broadcast %25 : vector<128x1xf32> to vector<128x128xf32>
    %27 = arith.addf %24, %26 : vector<128x128xf32>
    %cst_20 = arith.constant 0.000000e+00 : f32
    %28 = vector.broadcast %cst_20 : f32 to vector<128x128xf32>
    %29 = arith.maximumf %27, %28 : vector<128x128xf32>
    %c0_21 = arith.constant 0 : index
    %c0_22 = arith.constant 0 : index
    %30 = vector.load %arg9[%c0_21, %c0_22] : memref<128x1xf32, #tpu.memory_space<vmem>>, vector<128x1xf32>
    %31 = vector.broadcast %30 : vector<128x1xf32> to vector<128x128xf32>
    %32 = arith.mulf %29, %31 : vector<128x128xf32>
    %cst_23 = arith.constant dense<0.000000e+00> : vector<128xf32>
    %33 = vector.multi_reduction <add>, %32, %cst_23 [0] : vector<128x128xf32> to vector<128xf32>
    %34 = vector.shape_cast %33 : vector<128xf32> to vector<1x128xf32>
    %c0_24 = arith.constant 0 : index
    %c0_25 = arith.constant 0 : index
    %35 = vector.load %arg10[%c0_24, %c0_25] : memref<1x1xf32, #tpu.memory_space<vmem>>, vector<1x1xf32>
    %36 = vector.broadcast %35 : vector<1x1xf32> to vector<1x128xf32>
    %37 = arith.addf %34, %36 : vector<1x128xf32>
    %c0_26 = arith.constant 0 : index
    %c0_27 = arith.constant 0 : index
    %38 = vector.load %arg11[%c0_26, %c0_27] : memref<1x128xf32, #tpu.memory_space<vmem>>, vector<1x128xf32>
    tpu.vector_store %arg11[%c0_26, %c0_27], %37 {strides = array<i32>} : memref<1x128xf32, #tpu.memory_space<vmem>>, vector<1x128xf32>,
    return
  }
  func.func @transform_0(%arg0: i32) -> (i32, i32) {
    %c0_i32 = arith.constant 0 : i32
    %c0_i32_0 = arith.constant 0 : i32
    return %c0_i32, %arg0 : i32, i32
  }
  func.func @transform_1(%arg0: i32) -> (i32, i32) {
    %c0_i32 = arith.constant 0 : i32
    %c0_i32_0 = arith.constant 0 : i32
    %c0_i32_1 = arith.constant 0 : i32
    return %c0_i32, %c0_i32_0 : i32, i32
  }
  func.func @transform_2(%arg0: i32) -> (i32, i32) {
    %c0_i32 = arith.constant 0 : i32
    %c0_i32_0 = arith.constant 0 : i32
    %c0_i32_1 = arith.constant 0 : i32
    return %c0_i32, %c0_i32_0 : i32, i32
  }
  func.func @transform_3(%arg0: i32) -> (i32, i32) {
    %c0_i32 = arith.constant 0 : i32
    %c0_i32_0 = arith.constant 0 : i32
    %c0_i32_1 = arith.constant 0 : i32
    return %c0_i32, %c0_i32_0 : i32, i32
  }
  func.func @transform_4(%arg0: i32) -> (i32, i32) {
    %c0_i32 = arith.constant 0 : i32
    %c0_i32_0 = arith.constant 0 : i32
    %c0_i32_1 = arith.constant 0 : i32
    return %c0_i32, %c0_i32_0 : i32, i32
  }
  func.func @transform_5(%arg0: i32) -> (i32, i32) {
    %c0_i32 = arith.constant 0 : i32
    %c0_i32_0 = arith.constant 0 : i32
    %c0_i32_1 = arith.constant 0 : i32
    return %c0_i32, %c0_i32_0 : i32, i32
  }
  func.func @transform_6(%arg0: i32) -> (i32, i32) {
    %c0_i32 = arith.constant 0 : i32
    %c0_i32_0 = arith.constant 0 : i32
    %c0_i32_1 = arith.constant 0 : i32
    return %c0_i32, %c0_i32_0 : i32, i32
  }
  func.func @transform_7(%arg0: i32) -> (i32, i32) {
    %c0_i32 = arith.constant 0 : i32
    %c0_i32_0 = arith.constant 0 : i32
    %c0_i32_1 = arith.constant 0 : i32
    return %c0_i32, %c0_i32_0 : i32, i32
  }
  func.func @transform_8(%arg0: i32) -> (i32, i32) {
    %c0_i32 = arith.constant 0 : i32
    %c0_i32_0 = arith.constant 0 : i32
    %c0_i32_1 = arith.constant 0 : i32
    return %c0_i32, %c0_i32_0 : i32, i32
  }
  func.func @transform_9(%arg0: i32) -> (i32, i32) {
    %c0_i32 = arith.constant 0 : i32
    %c0_i32_0 = arith.constant 0 : i32
    %c0_i32_1 = arith.constant 0 : i32
    return %c0_i32, %c0_i32_0 : i32, i32
  }
  func.func @transform_10(%arg0: i32) -> (i32, i32) {
    %c0_i32 = arith.constant 0 : i32
    %c0_i32_0 = arith.constant 0 : i32
    return %c0_i32, %arg0 : i32, i32
  }
}

</mosaic_0001>

<bundles_post_ra>
// kernel: tpu_custom_call.1
= control target key start
LH: loop header
LB: loop body
LE: loop exit
PB: predicated region body
PF: predicated region fallthrough
CT: control target
= control target key end

     0   :  { %s2786_s0 = inlined_call_operand.vmem [shape: bf16[24,128], index: 0, kind: input, shape index: {}]   ;;  %s2787_s1 = inlined_call_operand.vmem [shape: bf16[384,24], index: 1, kind: input, shape index: {}]   ;;  %s2788_s2 = inlined_call_operand.vmem [shape: f32[384,1], index: 2, kind: input, shape index: {}]   ;;  %s2789_s3 = inlined_call_operand.vmem [shape: bf16[128,256], index: 3, kind: input, shape index: {}]   ;;  %s2790_s4 = inlined_call_operand.vmem [shape: f32[128,1], index: 4, kind: input, shape index: {}]   ;;  %s2791_s5 = inlined_call_operand.vmem [shape: bf16[128,128], index: 5, kind: input, shape index: {}]   ;;  %s2792_s6 = inlined_call_operand.vmem [shape: bf16[128,128], index: 6, kind: input, shape index: {}]   ;;  %s2793_s7 = inlined_call_operand.vmem [shape: f32[128,1], index: 7, kind: input, shape index: {}]   ;;  %s2794_s8 = inlined_call_operand.vmem [shape: f32[128,1], index: 8, kind: input, shape index: {}]   ;;  %s2795_s9 = inlined_call_operand.<no memory space> [shape: f32[1,1], index: 9, kind: input, shape index: {}]   ;;  %s2796_s10 = inlined_call_operand.hbm [shape: f32[1,128], index: 10, kind: output, shape index: {}]  }
   0x1   :  { %v15_v0 = vstv %s2795_s9 }
   0x2   :  { %16 = vst [vmem:[#allocation2] sm:$0x1] %v15_v0 }
   0x3   :  { %v120_v1 = vld [vmem:[%s2788_s2 + $0xf0] sm:$0xff]  ;;  %v118_v2 = vld [vmem:[%s2788_s2 + $0xe0] sm:$0xff]  ;;  %v1963_v4 = vmov 0   ;;  %v41_v5 = vld [vmem:[%s2786_s0 + $0x8] sm:$0xf]  ;;  %vm580_vm0 = vcmask 1043456  }
   0x4   :  { %v116_v3 = vld [vmem:[%s2788_s2 + $0xd0] sm:$0xff]  ;;  %1936 = vset.pattern.permute.xlu2 %v1963_v4  ;;  %1935 = vset.pattern.permute.xlu1 %v1963_v4  ;;  %v503_v6 = vunpack.c.l.b16 %v41_v5 }
   0x5   :  { %1934 = vset.pattern.permute.xlu0 %v1963_v4  ;;  %280 = vperm.xlu1 %1935, %v118_v2  }
   0x6   :  { %290 = vperm.xlu0 %1934, %v120_v1   ;;  %270 = vperm.xlu2 %1936, %v116_v3   ;;  %v505_v7 = vpack.c.b16 %v503_v6, %v503_v6 }
   0x8   :  { %v582_v8 = vsel %vm580_vm0, %v505_v7, 0 }
   0x9   :  { %17 = vsyncpa [#allocation4], 0  ;;  %590 = vmatpush.bf16.msra.mxu0 %v582_v8  ;;  %v119_v9 = vld [vmem:[%s2788_s2 + $0xe8] sm:$0xff]  ;;  %1921 = vmatpush.bf16.msra.mxu2 %v582_v8  ;;  %v121_v10 = vld [vmem:[%s2788_s2 + $0xf8] sm:$0xff]  ;;  %vm507_vm1 = vcmask 195584   ;;  %s1602_s19 = sshll.u32 %s2796_s10, 4  ;;  %s1603_s19 = int_to_ptr.hbm [resolvable:$true] %s1602_s19 }
   0xa   :  { %v117_v11 = vld [vmem:[%s2788_s2 + $0xd8] sm:$0xff]  ;;  %v1863_v12 = vld [vmem:[%s2786_s0] sm:$0xff]  ;;  %1920 = vmatpush.bf16.msra.mxu1 %v582_v8  ;;  %v115_v14 = vld [vmem:[%s2788_s2 + $0xc8] sm:$0xff] }
   0xb   :  { %v1864_v13 = vld [vmem:[%s2787_s1] sm:$0xff]  ;;  %v112_v16 = vld [vmem:[%s2788_s2 + $0xb0] sm:$0xff]  ;;  %v113_v18 = vld [vmem:[%s2788_s2 + $0xb8] sm:$0xff] }
   0xc   :  { %v114_v15 = vld [vmem:[%s2788_s2 + $0xc0] sm:$0xff]  ;;  %v111_v19 = vld [vmem:[%s2788_s2 + $0xa8] sm:$0xff]  ;;  %v109_v21 = vld [vmem:[%s2788_s2 + $0x98] sm:$0xff] }
   0xd   :  { %285 = vperm.xlu1 %1935, %v119_v9   ;;  %591 = vmatpush.bf16.msra.mxu0 %v1863_v12  ;;  %v110_v17 = vld [vmem:[%s2788_s2 + $0xa0] sm:$0xff]  ;;  %v1865_v20 = vld [vmem:[%s2787_s1 + $0x8] sm:$0xff]  ;;  %v108_v22 = vld [vmem:[%s2788_s2 + $0x90] sm:$0xff] }
   0xe   :  { %295 = vperm.xlu0 %1934, %v121_v10   ;;  %275 = vperm.xlu2 %1936, %v117_v11   ;;  %v106_v23 = vld [vmem:[%s2788_s2 + $0x80] sm:$0xff]  ;;  %v104_v24 = vld [vmem:[%s2788_s2 + $0x70] sm:$0xff]  ;;  %v107_v25 = vld [vmem:[%s2788_s2 + $0x88] sm:$0xff] }
   0xf   :  { %1923 = vmatpush.bf16.msra.mxu2 %v1863_v12  ;;  %1922 = vmatpush.bf16.msra.mxu1 %v1863_v12  ;;  %v105_v26 = vld [vmem:[%s2788_s2 + $0x78] sm:$0xff]  ;;  %v1866_v27 = vld [vmem:[%s2787_s1 + $0x10] sm:$0xff]  ;;  %v103_v28 = vld [vmem:[%s2788_s2 + $0x68] sm:$0xff] }
  0x10   :  { %1711 = vmatmul.msk.bf16.vlgmr.msra.gmra.mxu0 %vm507_vm1, %v1864_v13  ;;  %v102_v29 = vld [vmem:[%s2788_s2 + $0x60] sm:$0xff]  ;;  %v100_v30 = vld [vmem:[%s2788_s2 + $0x50] sm:$0xff]  ;;  %v1881_v31 = vld [vmem:[%s2787_s1 + $0x88] sm:$0xff] }
  0x11   :  { %v98_v32 = vld [vmem:[%s2788_s2 + $0x40] sm:$0xff]  ;;  %v101_v33 = vld [vmem:[%s2788_s2 + $0x58] sm:$0xff]  ;;  %v99_v34 = vld [vmem:[%s2788_s2 + $0x48] sm:$0xff] }
  0x12   :  { %1728 = vmatmul.msk.bf16.vlgmr.msra.gmra.mxu2 %vm507_vm1, %v1881_v31  ;;  %v1867_v35 = vld [vmem:[%s2787_s1 + $0x18] sm:$0xff]  ;;  %v96_v37 = vld [vmem:[%s2788_s2 + $0x30] sm:$0xff]  ;;  %v94_v38 = vld [vmem:[%s2788_s2 + $0x20] sm:$0xff] }
  0x13   :  { %v97_v36 = vld [vmem:[%s2788_s2 + $0x38] sm:$0xff]  ;;  %v1882_v39 = vld [vmem:[%s2787_s1 + $0x90] sm:$0xff]  ;;  %v95_v41 = vld [vmem:[%s2788_s2 + $0x28] sm:$0xff] }
  0x14   :  { %v92_v40 = vld [vmem:[%s2788_s2 + $0x10] sm:$0xff]  ;;  %v93_v42 = vld [vmem:[%s2788_s2 + $0x18] sm:$0xff]  ;;  %v1868_v43 = vld [vmem:[%s2787_s1 + $0x20] sm:$0xff] }
  0x15   :  { %265 = vperm.xlu1 %1935, %v115_v14   ;;  %v91_v44 = vld [vmem:[%s2788_s2 + $0x8] sm:$0xff]  ;;  %v90_v45 = vld [vmem:[%s2788_s2] sm:$0xff]  ;;  %v1883_v47 = vld [vmem:[%s2787_s1 + $0x98] sm:$0xff] }
  0x16   :  { %260 = vperm.xlu0 %1934, %v114_v15   ;;  %250 = vperm.xlu2 %1936, %v112_v16   ;;  %v122_v46 = vld [vmem:[%s2788_s2 + $0x100] sm:$0xff]  ;;  %v124_v48 = vld [vmem:[%s2788_s2 + $0x110] sm:$0xff]  ;;  %v123_v49 = vld [vmem:[%s2788_s2 + $0x108] sm:$0xff] }
  0x17   :  { %v125_v50 = vld [vmem:[%s2788_s2 + $0x118] sm:$0xff]  ;;  %v1869_v51 = vld [vmem:[%s2787_s1 + $0x28] sm:$0xff]  ;;  %v126_v54 = vld [vmem:[%s2788_s2 + $0x120] sm:$0xff] }
  0x18   :  { %v127_v53 = vld [vmem:[%s2788_s2 + $0x128] sm:$0xff]  ;;  %v128_v55 = vld [vmem:[%s2788_s2 + $0x130] sm:$0xff]  ;;  %v1884_v56 = vld [vmem:[%s2787_s1 + $0xa0] sm:$0xff] }
  0x19   :  { %v137_v58 = vld [vmem:[%s2788_s2 + $0x178] sm:$0xff]  ;;  %v136_v59 = vld [vmem:[%s2788_s2 + $0x170] sm:$0xff]  ;;  %v134_v60 = vld [vmem:[%s2788_s2 + $0x160] sm:$0xff] }
  0x1a   :  { %v1870_v61 = vld [vmem:[%s2787_s1 + $0x30] sm:$0xff]  ;;  %v135_v63 = vld [vmem:[%s2788_s2 + $0x168] sm:$0xff]  ;;  %v816_v0 = vld [vmem:[%s2790_s4 + $0x78] sm:$0xff] }
  0x1b   :  { %v815_v62 = vld [vmem:[%s2790_s4 + $0x70] sm:$0xff]  ;;  %v1885_v2 = vld [vmem:[%s2787_s1 + $0xa8] sm:$0xff]  ;;  %v133_v5 = vld [vmem:[%s2788_s2 + $0x158] sm:$0xff] }
  0x1c   :  { %v132_v6 = vld [vmem:[%s2788_s2 + $0x150] sm:$0xff]  ;;  %v813_v7 = vld [vmem:[%s2790_s4 + $0x60] sm:$0xff]  ;;  %v1871_v9 = vld [vmem:[%s2787_s1 + $0x38] sm:$0xff] }
  0x1d   :  { %240 = vperm.xlu1 %1935, %v110_v17   ;;  %v130_v12 = vld [vmem:[%s2788_s2 + $0x140] sm:$0xff]  ;;  %v814_v13 = vld [vmem:[%s2790_s4 + $0x68] sm:$0xff]  ;;  %v1886_v15 = vld [vmem:[%s2787_s1 + $0xb0] sm:$0xff] }
  0x1e   :  { %255 = vperm.xlu0 %1934, %v113_v18   ;;  %245 = vperm.xlu2 %1936, %v111_v19   ;;  %v131_v14 = vld [vmem:[%s2788_s2 + $0x148] sm:$0xff]  ;;  %v812_v19 = vld [vmem:[%s2790_s4 + $0x58] sm:$0xff] }
  0x20   :  { %1712 = vmatmul.msk.bf16.gmra.mxu0 %vm507_vm1, %v1865_v20  ;;  %v811_v20 = vld [vmem:[%s2790_s4 + $0x50] sm:$0xff] }
  0x22   :  { %1729 = vmatmul.msk.bf16.gmra.mxu2 %vm507_vm1, %v1882_v39 }
  0x25   :  { %235 = vperm.xlu1 %1935, %v109_v21   ;;  %v129_v21 = vld [vmem:[%s2788_s2 + $0x138] sm:$0xff] }
  0x26   :  { %230 = vperm.xlu0 %1934, %v108_v22   ;;  %220 = vperm.xlu2 %1936, %v106_v23   ;;  %v1872_v22 = vld [vmem:[%s2787_s1 + $0x40] sm:$0xff] }
  0x2d   :  { %210 = vperm.xlu1 %1935, %v104_v24  }
  0x2e   :  { %225 = vperm.xlu0 %1934, %v107_v25   ;;  %215 = vperm.xlu2 %1936, %v105_v26  }
  0x30   :  { %1713 = vmatmul.msk.bf16.gmra.mxu0 %vm507_vm1, %v1866_v27  ;;  %v810_v27 = vld [vmem:[%s2790_s4 + $0x48] sm:$0xff] }
  0x32   :  { %1730 = vmatmul.msk.bf16.gmra.mxu2 %vm507_vm1, %v1883_v47 }
  0x35   :  { %205 = vperm.xlu1 %1935, %v103_v28   ;;  %v809_v28 = vld [vmem:[%s2790_s4 + $0x40] sm:$0xff] }
  0x36   :  { %200 = vperm.xlu0 %1934, %v102_v29   ;;  %190 = vperm.xlu2 %1936, %v100_v30   ;;  %v807_v29 = vld [vmem:[%s2790_s4 + $0x30] sm:$0xff]  ;;  %v1887_v30 = vld [vmem:[%s2787_s1 + $0xb8] sm:$0xff] }
  0x3d   :  { %180 = vperm.xlu1 %1935, %v98_v32  }
  0x3e   :  { %195 = vperm.xlu0 %1934, %v101_v33   ;;  %185 = vperm.xlu2 %1936, %v99_v34   ;;  %v805_v34 = vld [vmem:[%s2790_s4 + $0x20] sm:$0xff] }
  0x40   :  { %1714 = vmatmul.msk.bf16.gmra.mxu0 %vm507_vm1, %v1867_v35  ;;  %v808_v35 = vld [vmem:[%s2790_s4 + $0x38] sm:$0xff] }
  0x42   :  { %1731 = vmatmul.msk.bf16.gmra.mxu2 %vm507_vm1, %v1884_v56 }
  0x45   :  { %175 = vperm.xlu1 %1935, %v97_v36   ;;  %v806_v36 = vld [vmem:[%s2790_s4 + $0x28] sm:$0xff] }
  0x46   :  { %170 = vperm.xlu0 %1934, %v96_v37   ;;  %160 = vperm.xlu2 %1936, %v94_v38   ;;  %v1873_v38 = vld [vmem:[%s2787_s1 + $0x48] sm:$0xff] }
  0x4d   :  { %150 = vperm.xlu1 %1935, %v92_v40  }
  0x4e   :  { %165 = vperm.xlu0 %1934, %v95_v41   ;;  %155 = vperm.xlu2 %1936, %v93_v42   ;;  %v804_v42 = vld [vmem:[%s2790_s4 + $0x18] sm:$0xff] }
  0x50   :  { %1715 = vmatmul.msk.bf16.gmra.mxu0 %vm507_vm1, %v1868_v43  ;;  %v803_v43 = vld [vmem:[%s2790_s4 + $0x10] sm:$0xff] }
  0x52   :  { %1732 = vmatmul.msk.bf16.gmra.mxu2 %vm507_vm1, %v1885_v2 }
  0x55   :  { %145 = vperm.xlu1 %1935, %v91_v44   ;;  %v801_v44 = vld [vmem:[%s2790_s4] sm:$0xff] }
  0x56   :  { %140 = vperm.xlu0 %1934, %v90_v45   ;;  %300 = vperm.xlu2 %1936, %v122_v46   ;;  %v1879_v46 = vld [vmem:[%s2787_s1 + $0x78] sm:$0xff] }
  0x57   :  { %1726 = vmatmul.msk.bf16.vlgmr.msra.gmra.mxu1 %vm507_vm1, %v1879_v46 }
  0x5d   :  { %310 = vperm.xlu1 %1935, %v124_v48  }
  0x5e   :  { %305 = vperm.xlu0 %1934, %v123_v49   ;;  %315 = vperm.xlu2 %1936, %v125_v50   ;;  %v1325_v50 = vld [vmem:[%s2793_s7] sm:$0xff] }
  0x60   :  { %v2172_v52 = vpop.permute.xlu2 %270  ;;  %1716 = vmatmul.msk.bf16.gmra.mxu0 %vm507_vm1, %v1869_v51  ;;  %v802_v51 = vld [vmem:[%s2790_s4 + $0x8] sm:$0xff] }
  0x62   :  { %1733 = vmatmul.msk.bf16.gmra.mxu2 %vm507_vm1, %v1886_v15  ;;  %v1875_v15 = vld [vmem:[%s2787_s1 + $0x58] sm:$0xff] }
  0x65   :  { %325 = vperm.xlu1 %1935, %v127_v53   ;;  %v1326_v53 = vld [vmem:[%s2793_s7 + $0x8] sm:$0xff] }
  0x66   :  { %320 = vperm.xlu0 %1934, %v126_v54   ;;  %330 = vperm.xlu2 %1936, %v128_v55   ;;  %v1874_v54 = vld [vmem:[%s2787_s1 + $0x50] sm:$0xff] }
  0x68   :  { %v2188_v57 = vpop.permute.xlu2 %275 }
  0x6d   :  { %375 = vperm.xlu1 %1935, %v137_v58  }
  0x6e   :  { %370 = vperm.xlu0 %1934, %v136_v59   ;;  %360 = vperm.xlu2 %1936, %v134_v60   ;;  %v1328_v60 = vld [vmem:[%s2793_s7 + $0x18] sm:$0xff] }
  0x70   :  { %1717 = vmatmul.msk.bf16.gmra.mxu0 %vm507_vm1, %v1870_v61  ;;  %v2212_v1 = vpop.permute.xlu2 %250  ;;  %v1327_v61 = vld [vmem:[%s2793_s7 + $0x10] sm:$0xff] }
  0x71   :  { %2797 = vst [vmem:[#allocation6_spill] sm:$0xff] %v2212_v1 }
  0x72   :  { %1734 = vmatmul.msk.bf16.gmra.mxu2 %vm507_vm1, %v1887_v30 }
  0x75   :  { %889 = vperm.xlu1 %1935, %v815_v62   ;;  %v1329_v62 = vld [vmem:[%s2793_s7 + $0x20] sm:$0xff] }
  0x76   :  { %365 = vperm.xlu0 %1934, %v135_v63   ;;  %894 = vperm.xlu2 %1936, %v816_v0   ;;  %v1880_v63 = vld [vmem:[%s2787_s1 + $0x80] sm:$0xff] }
  0x77   :  { %v2217_v3 = vpop.permute.xlu1 %280  ;;  %1727 = vmatmul.msk.bf16.gmra.mxu1 %vm507_vm1, %v1880_v63 }
  0x78   :  { %v2220_v4 = vpop.permute.xlu0 %290  ;;  %v2231_v8 = vpop.permute.xlu2 %245 }
  0x7d   :  { %355 = vperm.xlu1 %1935, %v133_v5  }
  0x7e   :  { %350 = vperm.xlu0 %1934, %v132_v6   ;;  %879 = vperm.xlu2 %1936, %v813_v7   ;;  %v1331_v6 = vld [vmem:[%s2793_s7 + $0x30] sm:$0xff] }
  0x7f   :  { %v2236_v10 = vpop.permute.xlu1 %285 }
  0x80   :  { %v2238_v11 = vpop.permute.xlu0 %295  ;;  %1718 = vmatmul.msk.bf16.gmra.mxu0 %vm507_vm1, %v1871_v9  ;;  %v2256_v17 = vpop.permute.xlu2 %220 }
  0x85   :  { %340 = vperm.xlu1 %1935, %v130_v12   ;;  %v1330_v12 = vld [vmem:[%s2793_s7 + $0x28] sm:$0xff] }
  0x86   :  { %884 = vperm.xlu0 %1934, %v814_v13   ;;  %345 = vperm.xlu2 %1936, %v131_v14   ;;  %v1332_v13 = vld [vmem:[%s2793_s7 + $0x38] sm:$0xff] }
  0x87   :  { %v2253_v16 = vpop.permute.xlu1 %265 }
  0x88   :  { %v2258_v18 = vpop.permute.xlu0 %260  ;;  %v2278_v26 = vpop.permute.xlu2 %215 }
  0x8d   :  { %874 = vperm.xlu1 %1935, %v812_v19   ;;  %v2272_v23 = vpop.f32.mrf.mxu0 }
  0x8e   :  { %869 = vperm.xlu0 %1934, %v811_v20   ;;  %335 = vperm.xlu2 %1936, %v129_v21  }
  0x8f   :  { %v2274_v24 = vpop.permute.xlu1 %240 }
  0x90   :  { %v2276_v25 = vpop.permute.xlu0 %255  ;;  %1719 = vmatmul.msk.bf16.gmra.mxu0 %vm507_vm1, %v1872_v22  ;;  %v2309_v37 = vpop.permute.xlu2 %190 }
  0x91   :  { %2798 = vst [vmem:[#allocation7_spill] sm:$0xff] %v2276_v25 }
  0x95   :  { %864 = vperm.xlu1 %1935, %v810_v27   ;;  %v2293_v31 = vpop.f32.mrf.mxu0  ;;  %v2371_v7 = vpop.f32.mrf.mxu2 }
  0x96   :  { %859 = vperm.xlu0 %1934, %v809_v28   ;;  %849 = vperm.xlu2 %1936, %v807_v29  }
  0x97   :  { %v2295_v32 = vpop.permute.xlu1 %235 }
  0x98   :  { %v2298_v33 = vpop.permute.xlu0 %230  ;;  %v2328_v45 = vpop.permute.xlu2 %185 }
  0x9d   :  { %839 = vperm.xlu1 %1935, %v805_v34   ;;  %v598_v39 = vpop.f32.mrf.mxu0  ;;  %v1334_v34 = vld [vmem:[%s2793_s7 + $0x48] sm:$0xff] }
  0x9e   :  { %854 = vperm.xlu0 %1934, %v808_v35   ;;  %844 = vperm.xlu2 %1936, %v806_v36   ;;  %v2386_v35 = vpop.f32.mrf.mxu2 }
  0x9f   :  { %v2314_v40 = vpop.permute.xlu1 %210 }
  0xa0   :  { %v2316_v41 = vpop.permute.xlu0 %225  ;;  %1720 = vmatmul.msk.bf16.gmra.mxu0 %vm507_vm1, %v1873_v38  ;;  %v161_v59 = vpop.permute.xlu2 %160 }
  0xa5   :  { %834 = vperm.xlu1 %1935, %v804_v42   ;;  %v600_v47 = vpop.f32.mrf.mxu0  ;;  %v1333_v42 = vld [vmem:[%s2793_s7 + $0x40] sm:$0xff] }
  0xa6   :  { %829 = vperm.xlu0 %1934, %v803_v43   ;;  %819 = vperm.xlu2 %1936, %v801_v44   ;;  %v2403_v63 = vpop.f32.mrf.mxu2 }
  0xa7   :  { %v2333_v48 = vpop.permute.xlu1 %205 }
  0xa8   :  { %v2335_v49 = vpop.permute.xlu0 %200  ;;  %v156_v9 = vpop.permute.xlu2 %155 }
  0xa9   :  { %v601_v14 = vadd.f32 %v600_v47, %v156_v9 }
  0xab   :  { %v716_v29 = vmax.f32 %v601_v14, 0.0  ;;  %v1339_v14 = vld [vmem:[%s2793_s7 + $0x70] sm:$0xff] }
  0xad   :  { %1343 = vperm.xlu1 %1935, %v1325_v50   ;;  %v603_v55 = vpop.f32.mrf.mxu0 }
  0xae   :  { %824 = vperm.xlu0 %1934, %v802_v51   ;;  %1348 = vperm.xlu2 %1936, %v1326_v53   ;;  %v604_v19 = vadd.f32 %v603_v55, %v161_v59 }
  0xaf   :  { %v2350_v56 = vpop.permute.xlu1 %180 }
  0xb0   :  { %v2352_v58 = vpop.permute.xlu0 %195  ;;  %1721 = vmatmul.msk.bf16.gmra.mxu0 %vm507_vm1, %v1874_v54  ;;  %v717_v36 = vmax.f32 %v604_v19, 0.0 }
  0xb5   :  { %1358 = vperm.xlu1 %1935, %v1328_v60   ;;  %v605_v0 = vpop.f32.mrf.mxu0 }
  0xb6   :  { %1353 = vperm.xlu0 %1934, %v1327_v61   ;;  %1363 = vperm.xlu2 %1936, %v1329_v62   ;;  %v1337_v62 = vld [vmem:[%s2793_s7 + $0x60] sm:$0xff] }
  0xb7   :  { %v176_v2 = vpop.permute.xlu1 %175 }
  0xb8   :  { %v171_v5 = vpop.permute.xlu0 %170 }
  0xbd   :  { %1373 = vperm.xlu1 %1935, %v1331_v6   ;;  %v608_v20 = vpop.f32.mrf.mxu0  ;;  %v1876_v6 = vld [vmem:[%s2787_s1 + $0x60] sm:$0xff] }
  0xbe   :  { %1368 = vperm.xlu0 %1934, %v1330_v12   ;;  %1378 = vperm.xlu2 %1936, %v1332_v13   ;;  %v609_v46 = vadd.f32 %v608_v20, %v171_v5  ;;  %v1336_v5 = vld [vmem:[%s2793_s7 + $0x58] sm:$0xff]  ;;  %v2424_v13 = vpop.f32.mrf.mxu2  ;;  %v1455_v20 = vld [vmem:[%s2794_s8 + $0x10] sm:$0xff] }
  0xbf   :  { %v151_v21 = vpop.permute.xlu1 %150  ;;  %v1340_v12 = vld [vmem:[%s2793_s7 + $0x78] sm:$0xff] }
  0xc0   :  { %v166_v22 = vpop.permute.xlu0 %165  ;;  %v599_v27 = vadd.f32 %v598_v39, %v151_v21  ;;  %1722 = vmatmul.msk.bf16.gmra.mxu0 %vm507_vm1, %v1875_v15  ;;  %v1335_v39 = vld [vmem:[%s2793_s7 + $0x50] sm:$0xff]  ;;  %v719_v59 = vmax.f32 %v609_v46, 0.0  ;;  %v1453_v15 = vld [vmem:[%s2794_s8] sm:$0xff] }
  0xc1   :  { %v606_v28 = vadd.f32 %v605_v0, %v166_v22  ;;  %v1454_v22 = vld [vmem:[%s2794_s8 + $0x8] sm:$0xff]  ;;  %v1461_v46 = vld [vmem:[%s2794_s8 + $0x40] sm:$0xff] }
  0xc2   :  { %v715_v30 = vmax.f32 %v599_v27, 0.0  ;;  %v1456_v27 = vld [vmem:[%s2794_s8 + $0x18] sm:$0xff] }
  0xc3   :  { %v718_v38 = vmax.f32 %v606_v28, 0.0  ;;  %v1877_v28 = vld [vmem:[%s2787_s1 + $0x68] sm:$0xff] }
  0xc4   :  { %v2394_v43 = vpack.c.bf16 %v716_v29, %v715_v30  ;;  %v1458_v30 = vld [vmem:[%s2794_s8 + $0x28] sm:$0xff] }
  0xc5   :  { %1388 = vperm.xlu1 %1935, %v1334_v34   ;;  %v2396_v44 = vpack.c.bf16 %v718_v38, %v717_v36  ;;  %v610_v47 = vpop.f32.mrf.mxu0  ;;  %v1457_v36 = vld [vmem:[%s2794_s8 + $0x20] sm:$0xff]  ;;  %v1459_v38 = vld [vmem:[%s2794_s8 + $0x30] sm:$0xff] }
  0xc6   :  { %1383 = vperm.xlu0 %1934, %v1333_v42   ;;  %1393 = vperm.xlu2 %1936, %v1335_v39   ;;  %v611_v51 = vadd.f32 %v610_v47, %v176_v2  ;;  %v2437_v21 = vpop.f32.mrf.mxu2  ;;  %v2460_v39 = vpop.permute.xlu2 %300 }
  0xc7   :  { %v146_v50 = vpop.permute.xlu1 %145 }
  0xc8   :  { %v596_v53 = vadd.f32 %v2293_v31, %v146_v50  ;;  %v141_v54 = vpop.permute.xlu0 %140  ;;  %v720_v60 = vmax.f32 %v611_v51, 0.0  ;;  %v1338_v31 = vld [vmem:[%s2793_s7 + $0x68] sm:$0xff]  ;;  %v1460_v50 = vld [vmem:[%s2794_s8 + $0x38] sm:$0xff] }
  0xc9   :  { %v594_v55 = vadd.f32 %v2272_v23, %v141_v54  ;;  %v1462_v51 = vld [vmem:[%s2794_s8 + $0x48] sm:$0xff] }
  0xca   :  { %v714_v61 = vmax.f32 %v596_v53, 0.0  ;;  %v2411_v2 = vpack.c.bf16 %v720_v60, %v719_v59  ;;  %v1878_v53 = vld [vmem:[%s2787_s1 + $0x70] sm:$0xff]  ;;  %v1464_v59 = vld [vmem:[%s2794_s8 + $0x58] sm:$0xff] }
  0xcb   :  { %v713_v0 = vmax.f32 %v594_v55, 0.0 }
  0xcd   :  { %1403 = vperm.xlu1 %1935, %v1337_v62   ;;  %v2413_v23 = vpack.c.bf16 %v714_v61, %v713_v0  ;;  %v2418_v9 = vpop.f32.mrf.mxu0  ;;  %v1463_v61 = vld [vmem:[%s2794_s8 + $0x50] sm:$0xff]  ;;  %v1465_v62 = vld [vmem:[%s2794_s8 + $0x60] sm:$0xff] }
  0xce   :  { %1398 = vperm.xlu0 %1934, %v1336_v5   ;;  %1408 = vperm.xlu2 %1936, %v1338_v31   ;;  %v2452_v34 = vpop.f32.mrf.mxu2  ;;  %v2476_v55 = vpop.permute.xlu2 %315  ;;  %v1467_v31 = vld [vmem:[%s2794_s8 + $0x70] sm:$0xff] }
  0xcf   :  { %v2490_v5 = vpop.permute.xlu1 %310 }
  0xd0   :  { %1723 = vmatmul.msk.bf16.gmra.mxu0 %vm507_vm1, %v1876_v6 }
  0xd5   :  { %1418 = vperm.xlu1 %1935, %v1340_v12   ;;  %v2432_v19 = vpop.f32.mrf.mxu0  ;;  %v1466_v12 = vld [vmem:[%s2794_s8 + $0x68] sm:$0xff] }
  0xd6   :  { %1413 = vperm.xlu0 %1934, %v1339_v14   ;;  %1471 = vperm.xlu2 %1936, %v1453_v15   ;;  %v2465_v47 = vpop.f32.mrf.mxu2  ;;  %v1468_v14 = vld [vmem:[%s2794_s8 + $0x78] sm:$0xff]  ;;  %v2503_v15 = vpop.permute.xlu2 %330 }
  0xdd   :  { %1481 = vperm.xlu1 %1935, %v1455_v20   ;;  %v618_v29 = vpop.f32.mrf.mxu0  ;;  %v2505_v20 = vpop.permute.xlu0 %305 }
  0xde   :  { %1476 = vperm.xlu0 %1934, %v1454_v22   ;;  %1486 = vperm.xlu2 %1936, %v1456_v27   ;;  %v2482_v60 = vpop.f32.mrf.mxu2  ;;  %v2507_v27 = vpop.permute.xlu1 %325 }
  0xe0   :  { %1724 = vmatmul.msk.bf16.gmra.mxu0 %vm507_vm1, %v1877_v28 }
  0xe5   :  { %1496 = vperm.xlu1 %1935, %v1458_v30   ;;  %v620_v42 = vpop.f32.mrf.mxu0  ;;  %v1586_v30 = vld [vmem:[#allocation2] sm:$0x1] }
  0xe6   :  { %1491 = vperm.xlu0 %1934, %v1457_v36   ;;  %1501 = vperm.xlu2 %1936, %v1459_v38   ;;  %v2495_v6 = vpop.f32.mrf.mxu2  ;;  %v361_v36 = vpop.permute.xlu2 %360 }
  0xed   :  { %1511 = vperm.xlu1 %1935, %v1461_v46   ;;  %v623_v54 = vpop.f32.mrf.mxu0  ;;  %v2512_v46 = vpop.permute.xlu0 %320 }
  0xee   :  { %1506 = vperm.xlu0 %1934, %v1460_v50   ;;  %1516 = vperm.xlu2 %1936, %v1462_v51   ;;  %v2509_v28 = vpop.f32.mrf.mxu2 }
  0xf0   :  { %1725 = vmatmul.msk.bf16.gmra.mxu0 %vm507_vm1, %v1878_v53 }
  0xf5   :  { %1526 = vperm.xlu1 %1935, %v1464_v59   ;;  %v625_v0 = vpop.f32.mrf.mxu0  ;;  %v624_v59 = vadd.f32 %v623_v54, %v2335_v49  ;;  %v371_v54 = vpop.permute.xlu0 %370 }
  0xf6   :  { %1521 = vperm.xlu0 %1934, %v1463_v61   ;;  %1531 = vperm.xlu2 %1936, %v1465_v62   ;;  %v626_v51 = vadd.f32 %v625_v0, %v2333_v48  ;;  %v616_v48 = vadd.f32 %v2432_v19, %v2328_v45  ;;  %v2521_v0 = vpop.permute.xlu2 %894 }
  0xf8   :  { %v726_v1 = vmax.f32 %v626_v51, 0.0 }
  0xfd   :  { %1541 = vperm.xlu1 %1935, %v1467_v31   ;;  %v628_v22 = vpop.f32.mrf.mxu0  ;;  %v703_v31 = vpop.f32.mrf.mxu2 }
  0xfe   :  { %1536 = vperm.xlu0 %1934, %v1466_v12   ;;  %1546 = vperm.xlu2 %1936, %v1468_v14   ;;  %v629_v38 = vadd.f32 %v628_v22, %v2314_v40  ;;  %v376_v12 = vpop.permute.xlu1 %375  ;;  %v621_v14 = vadd.f32 %v620_v42, %v2352_v58  ;;  %v619_v40 = vadd.f32 %v618_v29, %v2309_v37  ;;  %v725_v22 = vmax.f32 %v624_v59, 0.0 }
  0xff   :  { %v722_v37 = vmax.f32 %v616_v48, 0.0 }
 0x100   :  { %v727_v61 = vmax.f32 %v629_v38, 0.0  ;;  %v767_v49 = vpack.c.bf16 %v726_v1, %v725_v22  ;;  %v614_v38 = vadd.f32 %v2418_v9, %v2350_v56  ;;  %v723_v58 = vmax.f32 %v619_v40, 0.0 }
 0x101   :  { %v704_v22 = vadd.f32 %v703_v31, %v361_v36  ;;  %v1753_v36 = vld [vmem:[%s2789_s3 + $0x20] sm:$0xf]  ;;  %v1893_v31 = vld [vmem:[%s2789_s3 + $0x24] sm:$0xf0] }
 0x105   :  { %v630_v50 = vpop.f32.mrf.mxu0  ;;  %v705_v42 = vpop.f32.mrf.mxu2 }
 0x106   :  { %1589 = vperm.xlu0 %1934, %v1586_v30   ;;  %v631_v53 = vadd.f32 %v630_v50, %v2278_v26  ;;  %v724_v26 = vmax.f32 %v621_v14, 0.0  ;;  %v721_v50 = vmax.f32 %v614_v38, 0.0 }
 0x108   :  { %v728_v62 = vmax.f32 %v631_v53, 0.0  ;;  %v766_v29 = vpack.c.bf16 %v724_v26, %v723_v58  ;;  %v765_v19 = vpack.c.bf16 %v722_v37, %v721_v50  ;;  %v2529_v53 = vpop.permute.xlu2 %879  ;;  %v1737_v58 = vld [vmem:[%s2789_s3] sm:$0xf] }
 0x10a   :  { %v768_v25 = vpack.c.bf16 %v728_v62, %v727_v61  ;;  %v366_v61 = vpop.permute.xlu0 %365 }
 0x10c   :  { %977 = vmatpush.bf16.msrb.mxu1 %v768_v25  ;;  %1924 = vmatpush.bf16.msra.mxu3 %v768_v25  ;;  %v2525_v25 = vpop.permute.xlu1 %889 }
 0x10d   :  { %v633_v30 = vpop.f32.mrf.mxu0  ;;  %v708_v59 = vpop.f32.mrf.mxu2 }
 0x10e   :  { %v634_v51 = vadd.f32 %v633_v30, %v2256_v17  ;;  %v709_v14 = vadd.f32 %v708_v59, %v371_v54  ;;  %v706_v30 = vadd.f32 %v705_v42, %v366_v61 }
 0x110   :  { %978 = vmatpush.bf16.msrb.mxu1 %v767_v49  ;;  %1925 = vmatpush.bf16.msra.mxu3 %v767_v49  ;;  %v729_v56 = vmax.f32 %v634_v51, 0.0  ;;  %v759_v48 = vmax.f32 %v709_v14, 0.0  ;;  %v346_v49 = vpop.permute.xlu2 %345  ;;  %v758_v42 = vmax.f32 %v706_v30, 0.0 }
 0x112   :  { %v351_v38 = vpop.permute.xlu0 %350 }
 0x113   :  { %v699_v54 = vadd.f32 %v2495_v6, %v351_v38 }
 0x114   :  { %979 = vmatpush.bf16.msrb.mxu1 %v766_v29  ;;  %1926 = vmatpush.bf16.msra.mxu3 %v766_v29  ;;  %v356_v40 = vpop.permute.xlu1 %355 }
 0x115   :  { %v635_v45 = vpop.f32.mrf.mxu0  ;;  %v701_v6 = vadd.f32 %v2509_v28, %v356_v40  ;;  %v755_v28 = vmax.f32 %v699_v54, 0.0 }
 0x116   :  { %v636_v1 = vadd.f32 %v635_v45, %v2316_v41  ;;  %v710_v41 = vpop.f32.mrf.mxu2  ;;  %v1754_v45 = vor.u32 %v1893_v31, %v1753_v36 }
 0x117   :  { %v711_v26 = vadd.f32 %v710_v41, %v376_v12  ;;  %v756_v61 = vmax.f32 %v701_v6, 0.0 }
 0x118   :  { %v730_v9 = vmax.f32 %v636_v1, 0.0  ;;  %980 = vmatpush.bf16.msrb.mxu1 %v765_v19  ;;  %1927 = vmatpush.bf16.msra.mxu3 %v765_v19  ;;  %v696_v19 = vadd.f32 %v2482_v60, %v346_v49  ;;  %v689_v60 = vadd.f32 %v2437_v21, %v2503_v15  ;;  %v336_v40 = vpop.permute.xlu2 %335  ;;  %v1745_v21 = vld [vmem:[%s2789_s3 + $0x10] sm:$0xf]  ;;  %v681_v15 = vadd.f32 %v2386_v35, %v2476_v55 }
 0x119   :  { %v760_v37 = vmax.f32 %v711_v26, 0.0  ;;  %v691_v41 = vadd.f32 %v2452_v34, %v336_v40  ;;  %v684_v26 = vadd.f32 %v2403_v63, %v2512_v46  ;;  %v1761_v63 = vld [vmem:[%s2789_s3 + $0x30] sm:$0xf]  ;;  %v679_v46 = vadd.f32 %v2371_v7, %v2490_v5 }
 0x11a   :  { %v2531_v62 = vpack.c.bf16 %v730_v9, %v729_v56  ;;  %v754_v30 = vmax.f32 %v696_v19, 0.0  ;;  %v751_v49 = vmax.f32 %v689_v60, 0.0 }
 0x11b   :  { %v784_v50 = vpack.c.bf16 %v760_v37, %v759_v48  ;;  %v686_v48 = vadd.f32 %v2424_v13, %v2507_v27  ;;  %v752_v38 = vmax.f32 %v691_v41, 0.0  ;;  %v1891_v13 = vld [vmem:[%s2789_s3 + $0x14] sm:$0xf0]  ;;  %v749_v54 = vmax.f32 %v684_v26, 0.0 }
 0x11c   :  { %981 = vmatpush.bf16.msrb.mxu1 %v2411_v2  ;;  %1928 = vmatpush.bf16.msra.mxu3 %v2411_v2  ;;  %v2540_v2 = vpop.f32.mrf.mxu1  ;;  %v341_v1 = vpop.permute.xlu1 %340  ;;  %v1895_v27 = vld [vmem:[%s2789_s3 + $0x34] sm:$0xf0] }
 0x11d   :  { %v638_v17 = vpop.f32.mrf.mxu0  ;;  %v694_v59 = vadd.f32 %v2465_v47, %v341_v1  ;;  %v782_v47 = vpack.c.bf16 %v756_v61, %v755_v28  ;;  %v1762_v36 = vor.u32 %v1895_v27, %v1761_v63 }
 0x11e   :  { %v639_v29 = vadd.f32 %v638_v17, %v2298_v33  ;;  %v757_v33 = vmax.f32 %v704_v22, 0.0 }
 0x11f   :  { %v753_v22 = vmax.f32 %v694_v59, 0.0  ;;  %v1897_v59 = vld [vmem:[%s2789_s3 + $0x44] sm:$0xf0] }
 0x120   :  { %982 = vmatpush.bf16.msrb.mxu1 %v2396_v44  ;;  %1929 = vmatpush.bf16.msra.mxu3 %v2396_v44  ;;  %v1889_v44 = vld [vmem:[%s2789_s3 + $0x4] sm:$0xf0]  ;;  %v731_v56 = vmax.f32 %v639_v29, 0.0  ;;  %v783_v17 = vpack.c.bf16 %v758_v42, %v757_v33  ;;  %v750_v29 = vmax.f32 %v686_v48, 0.0  ;;  %v747_v42 = vmax.f32 %v679_v46, 0.0 }
 0x121   :  { %v1738_v51 = vor.u32 %v1889_v44, %v1737_v58  ;;  %v781_v58 = vpack.c.bf16 %v754_v30, %v753_v22  ;;  %v1746_v44 = vor.u32 %v1891_v13, %v1745_v21  ;;  %v1785_v22 = vld [vmem:[%s2789_s3 + $0x60] sm:$0xf]  ;;  %v1901_v30 = vld [vmem:[%s2789_s3 + $0x64] sm:$0xf0] }
 0x122   :  { %v779_v5 = vpack.c.bf16 %v750_v29, %v749_v54 }
 0x124   :  { %983 = vmatpush.bf16.msrb.mxu1 %v2394_v43  ;;  %1930 = vmatpush.bf16.msra.mxu3 %v2394_v43 }
 0x125   :  { %v640_v12 = vpop.f32.mrf.mxu0 }
 0x126   :  { %v641_v43 = vadd.f32 %v640_v12, %v2295_v32  ;;  %v670_v32 = vpop.f32.mrf.mxu1  ;;  %v669_v12 = vadd.f32 %v2540_v2, %v2220_v4 }
 0x127   :  { %v671_v33 = vadd.f32 %v670_v32, %v2238_v11  ;;  %v1899_v32 = vld [vmem:[%s2789_s3 + $0x54] sm:$0xf0] }
 0x128   :  { %v732_v9 = vmax.f32 %v641_v43, 0.0  ;;  %984 = vmatpush.bf16.msrb.mxu1 %v2413_v23  ;;  %1931 = vmatpush.bf16.msra.mxu3 %v2413_v23 }
 0x12a   :  { %v2561_v14 = vpack.c.bf16 %v732_v9, %v731_v56 }
 0x12b   :  { %985 = vmatmul.bf16.vlgmr.msrb.gmra.mxu1 %v1738_v51  ;;  %995 = vmatmul.bf16.vlgmr.msra.gmra.mxu3 %v1754_v45  ;;  %v743_v51 = vmax.f32 %v669_v12, 0.0  ;;  %v744_v45 = vmax.f32 %v671_v33, 0.0  ;;  %v1739_v12 = vld [vmem:[%s2789_s3 + $0x8] sm:$0xf0] }
 0x12c   :  { %1179 = vmatpush.bf16.msrb.mxu3 %v784_v50  ;;  %v748_v50 = vmax.f32 %v681_v15, 0.0 }
 0x12d   :  { %v643_v23 = vpop.f32.mrf.mxu0  ;;  %v776_v2 = vpack.c.bf16 %v744_v45, %v743_v51  ;;  %v1896_v45 = vld [vmem:[%s2789_s3 + $0x44] sm:$0xf] }
 0x12e   :  { %v673_v34 = vpop.f32.mrf.mxu1  ;;  %v644_v37 = vadd.f32 %v643_v23, %v2274_v24  ;;  %v780_v24 = vpack.c.bf16 %v752_v38, %v751_v49  ;;  %v778_v4 = vpack.c.bf16 %v748_v50, %v747_v42  ;;  %v1793_v49 = vld [vmem:[%s2789_s3 + $0x70] sm:$0xf]  ;;  %v1903_v38 = vld [vmem:[%s2789_s3 + $0x74] sm:$0xf0]  ;;  %v1890_v42 = vld [vmem:[%s2789_s3 + $0x14] sm:$0xf] }
 0x12f   :  { %v674_v7 = vadd.f32 %v673_v34, %v2460_v39  ;;  %1026 = vmatpush.bf16.msrb.mxu2 %v776_v2  ;;  %v1769_v39 = vld [vmem:[%s2789_s3 + $0x40] sm:$0xf]  ;;  %v1794_v15 = vor.u32 %v1903_v38, %v1793_v49  ;;  %v2666_v2 = vpop.permute.xlu0 %884 }
 0x130   :  { %1180 = vmatpush.bf16.msrb.mxu3 %v783_v17  ;;  %v733_v31 = vmax.f32 %v644_v37, 0.0  ;;  %v1777_v17 = vld [vmem:[%s2789_s3 + $0x50] sm:$0xf] }
 0x131   :  { %v745_v56 = vmax.f32 %v674_v7, 0.0  ;;  %v1778_v40 = vor.u32 %v1899_v32, %v1777_v17  ;;  %v1892_v7 = vld [vmem:[%s2789_s3 + $0x24] sm:$0xf] }
 0x134   :  { %1181 = vmatpush.bf16.msrb.mxu3 %v782_v47  ;;  %v1786_v47 = vor.u32 %v1901_v30, %v1785_v22  ;;  %v2682_v22 = vpop.permute.xlu1 %874 }
 0x135   :  { %v645_v35 = vpop.f32.mrf.mxu0 }
 0x136   :  { %v646_v55 = vadd.f32 %v645_v35, %v2231_v8  ;;  %v675_v8 = vpop.f32.mrf.mxu1  ;;  %v2799_v35 = vld [vmem:[#allocation7_spill] sm:$0xff] }
 0x137   :  { %v676_v1 = vadd.f32 %v675_v8, %v2505_v20  ;;  %v1770_v20 = vor.u32 %v1897_v59, %v1769_v39  ;;  %v1763_v8 = vld [vmem:[%s2789_s3 + $0x38] sm:$0xf0]  ;;  %v1787_v39 = vld [vmem:[%s2789_s3 + $0x68] sm:$0xf0] }
 0x138   :  { %1182 = vmatpush.bf16.msrb.mxu3 %v781_v58  ;;  %v734_v6 = vmax.f32 %v646_v55, 0.0 }
 0x139   :  { %v746_v11 = vmax.f32 %v676_v1, 0.0  ;;  %v1771_v1 = vld [vmem:[%s2789_s3 + $0x48] sm:$0xf0] }
 0x13a   :  { %v2592_v43 = vpack.c.bf16 %v734_v6, %v733_v31 }
 0x13b   :  { %990 = vmatmul.bf16.gmra.mxu1 %v1746_v44  ;;  %1000 = vmatmul.bf16.gmra.mxu3 %v1762_v36  ;;  %v777_v9 = vpack.c.bf16 %v746_v11, %v745_v56  ;;  %v2800_v44 = vld [vmem:[#allocation6_spill] sm:$0xff]  ;;  %v1898_v56 = vld [vmem:[%s2789_s3 + $0x54] sm:$0xf] }
 0x13c   :  { %1183 = vmatpush.bf16.msrb.mxu3 %v780_v24 }
 0x13d   :  { %v648_v19 = vpop.f32.mrf.mxu0 }
 0x140   :  { %1184 = vmatpush.bf16.msrb.mxu3 %v779_v5  ;;  %v1755_v5 = vld [vmem:[%s2789_s3 + $0x28] sm:$0xf0] }
 0x144   :  { %1185 = vmatpush.bf16.msrb.mxu3 %v778_v4  ;;  %v1779_v4 = vld [vmem:[%s2789_s3 + $0x58] sm:$0xf0] }
 0x145   :  { %v650_v28 = vpop.f32.mrf.mxu0  ;;  %v1782_v11 = vor.u32 %v1898_v56, %v1779_v4 }
 0x146   :  { %v651_v24 = vadd.f32 %v650_v28, %v2799_v35  ;;  %v2674_v28 = vpop.permute.xlu0 %869 }
 0x148   :  { %1186 = vmatpush.bf16.msrb.mxu3 %v777_v9  ;;  %v1900_v9 = vld [vmem:[%s2789_s3 + $0x64] sm:$0xf] }
 0x149   :  { %v1790_v59 = vor.u32 %v1900_v9, %v1787_v39 }
 0x14b   :  { %1005 = vmatmul.bf16.gmra.mxu3 %v1770_v20  ;;  %v1902_v20 = vld [vmem:[%s2789_s3 + $0x74] sm:$0xf] }
 0x14d   :  { %v653_v61 = vpop.f32.mrf.mxu0 }
 0x14e   :  { %v654_v54 = vadd.f32 %v653_v61, %v2258_v18  ;;  %v1888_v18 = vld [vmem:[%s2789_s3 + $0x4] sm:$0xf]  ;;  %v1795_v61 = vld [vmem:[%s2789_s3 + $0x78] sm:$0xf0]  ;;  %v860_v17 = vpop.permute.xlu0 %859 }
 0x14f   :  { %v1742_v33 = vor.u32 %v1888_v18, %v1739_v12  ;;  %v1798_v32 = vor.u32 %v1902_v20, %v1795_v61 }
 0x150   :  { %v737_v36 = vmax.f32 %v654_v54, 0.0 }
 0x155   :  { %v655_v60 = vpop.f32.mrf.mxu0 }
 0x15b   :  { %1010 = vmatmul.bf16.gmra.mxu3 %v1778_v40  ;;  %v855_v40 = vpop.permute.xlu0 %854 }
 0x15d   :  { %v658_v41 = vpop.f32.mrf.mxu0 }
 0x15e   :  { %v659_v37 = vadd.f32 %v658_v41, %v2172_v52  ;;  %v736_v52 = vmax.f32 %v651_v24, 0.0 }
 0x160   :  { %v739_v29 = vmax.f32 %v659_v37, 0.0 }
 0x165   :  { %v660_v23 = vpop.f32.mrf.mxu0 }
 0x166   :  { %v661_v21 = vadd.f32 %v660_v23, %v2188_v57  ;;  %v830_v23 = vpop.permute.xlu0 %829 }
 0x168   :  { %v740_v27 = vmax.f32 %v661_v21, 0.0 }
 0x16a   :  { %v774_v57 = vpack.c.bf16 %v740_v27, %v739_v29 }
 0x16b   :  { %1015 = vmatmul.bf16.gmra.mxu3 %v1786_v47 }
 0x16d   :  { %v663_v48 = vpop.f32.mrf.mxu0 }
 0x16e   :  { %v664_v26 = vadd.f32 %v663_v48, %v2217_v3  ;;  %v656_v3 = vadd.f32 %v655_v60, %v2253_v16  ;;  %v850_v60 = vpop.permute.xlu2 %849 }
 0x170   :  { %v741_v13 = vmax.f32 %v664_v26, 0.0  ;;  %v738_v55 = vmax.f32 %v656_v3, 0.0  ;;  %v2684_v26 = vpop.permute.xlu1 %864 }
 0x172   :  { %v773_v31 = vpack.c.bf16 %v738_v55, %v737_v36 }
 0x175   :  { %v665_v58 = vpop.f32.mrf.mxu0 }
 0x176   :  { %v666_v34 = vadd.f32 %v665_v58, %v2236_v10  ;;  %v649_v10 = vadd.f32 %v648_v19, %v2800_v44  ;;  %v1774_v19 = vor.u32 %v1896_v45, %v1771_v1  ;;  %v845_v30 = vpop.permute.xlu2 %844  ;;  %v825_v58 = vpop.permute.xlu0 %824 }
 0x178   :  { %v742_v63 = vmax.f32 %v666_v34, 0.0  ;;  %v735_v6 = vmax.f32 %v649_v10, 0.0 }
 0x17a   :  { %v775_v46 = vpack.c.bf16 %v742_v63, %v741_v13  ;;  %v772_v16 = vpack.c.bf16 %v736_v52, %v735_v6 }
 0x17b   :  { %1020 = vmatmul.bf16.gmra.mxu3 %v1794_v15 }
 0x17c   :  { %1027 = vmatpush.bf16.msrb.mxu2 %v775_v46  ;;  %v840_v46 = vpop.permute.xlu1 %839 }
 0x17e   :  { %v820_v49 = vpop.permute.xlu2 %819 }
 0x180   :  { %1028 = vmatpush.bf16.msrb.mxu2 %v774_v57 }
 0x184   :  { %1029 = vmatpush.bf16.msrb.mxu2 %v773_v31  ;;  %v835_v57 = vpop.permute.xlu1 %834 }
 0x188   :  { %1030 = vmatpush.bf16.msrb.mxu2 %v772_v16 }
 0x18c   :  { %1031 = vmatpush.bf16.msrb.mxu2 %v2592_v43  ;;  %v1894_v43 = vld [vmem:[%s2789_s3 + $0x34] sm:$0xf] }
 0x18d   :  { %v1766_v51 = vor.u32 %v1894_v43, %v1763_v8 }
 0x190   :  { %1032 = vmatpush.bf16.msrb.mxu2 %v2561_v14  ;;  %v1747_v14 = vld [vmem:[%s2789_s3 + $0x18] sm:$0xf0] }
 0x191   :  { %v1750_v50 = vor.u32 %v1890_v42, %v1747_v14 }
 0x194   :  { %1033 = vmatpush.bf16.msrb.mxu2 %v2531_v62  ;;  %v1758_v62 = vor.u32 %v1892_v7, %v1755_v5 }
 0x197   :  { %1034 = vmatmul.bf16.vlgmr.msrb.gmra.mxu2 %v1742_v33 }
 0x1a7   :  { %1039 = vmatmul.bf16.gmra.mxu2 %v1750_v50 }
 0x1a8   :  { %v986_v41 = vpop.f32.mrf.mxu1 }
 0x1a9   :  { %v987_v38 = vadd.f32 %v986_v41, %v820_v49 }
 0x1ae   :  { %v996_v21 = vpop.f32.mrf.mxu3 }
 0x1af   :  { %v997_v12 = vadd.f32 %v996_v21, %v840_v46 }
 0x1b0   :  { %v988_v47 = vpop.f32.mrf.mxu1 }
 0x1b1   :  { %v989_v34 = vadd.f32 %v988_v47, %v825_v58 }
 0x1b6   :  { %v998_v29 = vpop.f32.mrf.mxu3 }
 0x1b7   :  { %1044 = vmatmul.bf16.gmra.mxu2 %v1758_v62  ;;  %v999_v50 = vadd.f32 %v998_v29, %v845_v30 }
 0x1b8   :  { %v991_v63 = vpop.f32.mrf.mxu1 }
 0x1b9   :  { %v992_v55 = vadd.f32 %v991_v63, %v830_v23 }
 0x1be   :  { %v1001_v31 = vpop.f32.mrf.mxu3 }
 0x1bf   :  { %v1002_v45 = vadd.f32 %v1001_v31, %v850_v60 }
 0x1c0   :  { %v993_v24 = vpop.f32.mrf.mxu1 }
 0x1c1   :  { %v994_v44 = vadd.f32 %v993_v24, %v835_v57 }
 0x1c6   :  { %v1003_v14 = vpop.f32.mrf.mxu3 }
 0x1c7   :  { %1049 = vmatmul.bf16.gmra.mxu2 %v1766_v51  ;;  %v1004_v56 = vadd.f32 %v1003_v14, %v855_v40  ;;  %v1912_v40 = vld [vmem:[%s2792_s6] sm:$0xff] }
 0x1c8   :  { %1187 = vmatmul.bf16.vlgmr.msrb.gmra.mxu3 %v1912_v40 }
 0x1ce   :  { %v1006_v51 = vpop.f32.mrf.mxu3 }
 0x1cf   :  { %v1007_v61 = vadd.f32 %v1006_v51, %v860_v17  ;;  %v1908_v51 = vld [vmem:[%s2791_s5 + $0x20] sm:$0xff] }
 0x1d6   :  { %v1008_v4 = vpop.f32.mrf.mxu3 }
 0x1d7   :  { %1054 = vmatmul.bf16.gmra.mxu2 %v1774_v19 }
 0x1de   :  { %v1011_v30 = vpop.f32.mrf.mxu3 }
 0x1e6   :  { %v1013_v47 = vpop.f32.mrf.mxu3 }
 0x1e7   :  { %1059 = vmatmul.bf16.gmra.mxu2 %v1782_v11  ;;  %v1014_v24 = vadd.f32 %v1013_v47, %v2682_v22 }
 0x1ee   :  { %v1016_v49 = vpop.f32.mrf.mxu3 }
 0x1ef   :  { %v1017_v46 = vadd.f32 %v1016_v49, %v2529_v53 }
 0x1f6   :  { %v1018_v58 = vpop.f32.mrf.mxu3 }
 0x1f7   :  { %1064 = vmatmul.bf16.gmra.mxu2 %v1790_v59 }
 0x207   :  { %1069 = vmatmul.bf16.gmra.mxu2 %v1798_v32 }
 0x21a   :  { %v1035_v48 = vpop.f32.mrf.mxu2 }
 0x21b   :  { %v1036_v15 = vadd.f32 %v1035_v48, %v987_v38 }
 0x21d   :  { %v1075_v3 = vmax.f32 %v1036_v15, 0.0 }
 0x222   :  { %v1037_v37 = vpop.f32.mrf.mxu2 }
 0x223   :  { %v1038_v13 = vadd.f32 %v1037_v37, %v989_v34  ;;  %v1021_v34 = vpop.f32.mrf.mxu3 }
 0x224   :  { %v1022_v17 = vadd.f32 %v1021_v34, %v2525_v25 }
 0x225   :  { %v1076_v27 = vmax.f32 %v1038_v13, 0.0  ;;  %v1019_v13 = vadd.f32 %v1018_v58, %v2666_v2  ;;  %v1009_v2 = vadd.f32 %v1008_v4, %v2684_v26  ;;  %v1904_v26 = vld [vmem:[%s2791_s5] sm:$0xff]  ;;  %v1349_v4 = vpop.permute.xlu2 %1348 }
 0x227   :  { %v2686_v54 = vpack.c.bf16 %v1076_v27, %v1075_v3 }
 0x22a   :  { %v1040_v35 = vpop.f32.mrf.mxu2 }
 0x22b   :  { %v1041_v10 = vadd.f32 %v1040_v35, %v992_v55  ;;  %v1023_v37 = vpop.f32.mrf.mxu3 }
 0x22c   :  { %v1024_v63 = vadd.f32 %v1023_v37, %v2521_v0  ;;  %v1913_v0 = vld [vmem:[%s2792_s6 + $0x8] sm:$0xff] }
 0x22d   :  { %v1077_v6 = vmax.f32 %v1041_v10, 0.0  ;;  %v1012_v10 = vadd.f32 %v1011_v30, %v2674_v28  ;;  %1192 = vmatmul.bf16.gmra.mxu3 %v1913_v0 }
 0x232   :  { %v1042_v36 = vpop.f32.mrf.mxu2 }
 0x233   :  { %v1043_v52 = vadd.f32 %v1042_v36, %v994_v44 }
 0x235   :  { %v1078_v16 = vmax.f32 %v1043_v52, 0.0 }
 0x237   :  { %v2688_v18 = vpack.c.bf16 %v1078_v16, %v1077_v6 }
 0x23a   :  { %v1045_v33 = vpop.f32.mrf.mxu2 }
 0x23b   :  { %v1046_v42 = vadd.f32 %v1045_v33, %v997_v12 }
 0x23d   :  { %v1079_v62 = vmax.f32 %v1046_v42, 0.0 }
 0x242   :  { %v1047_v7 = vpop.f32.mrf.mxu2 }
 0x243   :  { %v1048_v5 = vadd.f32 %v1047_v7, %v999_v50  ;;  %v1914_v50 = vld [vmem:[%s2792_s6 + $0x10] sm:$0xff]  ;;  %v1915_v7 = vld [vmem:[%s2792_s6 + $0x18] sm:$0xff] }
 0x244   :  { %1197 = vmatmul.bf16.gmra.mxu3 %v1914_v50 }
 0x245   :  { %v1080_v43 = vmax.f32 %v1048_v5, 0.0  ;;  %v1905_v5 = vld [vmem:[%s2791_s5 + $0x8] sm:$0xff] }
 0x247   :  { %v2690_v8 = vpack.c.bf16 %v1080_v43, %v1079_v62  ;;  %v1917_v62 = vld [vmem:[%s2792_s6 + $0x28] sm:$0xff]  ;;  %v1907_v43 = vld [vmem:[%s2791_s5 + $0x18] sm:$0xff] }
 0x24a   :  { %v1050_v1 = vpop.f32.mrf.mxu2 }
 0x24b   :  { %v1051_v19 = vadd.f32 %v1050_v1, %v1002_v45  ;;  %v1919_v45 = vld [vmem:[%s2792_s6 + $0x38] sm:$0xff]  ;;  %v1909_v1 = vld [vmem:[%s2791_s5 + $0x28] sm:$0xff] }
 0x24d   :  { %v1081_v39 = vmax.f32 %v1051_v19, 0.0  ;;  %v1344_v19 = vpop.permute.xlu1 %1343 }
 0x252   :  { %v1052_v11 = vpop.f32.mrf.mxu2 }
 0x253   :  { %v1053_v9 = vadd.f32 %v1052_v11, %v1004_v56  ;;  %v1354_v56 = vpop.permute.xlu0 %1353  ;;  %v1910_v11 = vld [vmem:[%s2791_s5 + $0x30] sm:$0xff] }
 0x254   :  { %1202 = vmatmul.bf16.gmra.mxu3 %v1915_v7 }
 0x255   :  { %v1082_v59 = vmax.f32 %v1053_v9, 0.0  ;;  %v1188_v9 = vpop.f32.mrf.mxu3 }
 0x257   :  { %v1110_v20 = vpack.c.bf16 %v1082_v59, %v1081_v39  ;;  %v1359_v39 = vpop.permute.xlu1 %1358 }
 0x25a   :  { %v1055_v32 = vpop.f32.mrf.mxu2 }
 0x25b   :  { %v1056_v41 = vadd.f32 %v1055_v32, %v1007_v61  ;;  %v2747_v59 = vpop.permute.xlu0 %1368 }
 0x25d   :  { %v1083_v42 = vmax.f32 %v1056_v41, 0.0  ;;  %v1190_v61 = vpop.f32.mrf.mxu3  ;;  %v1911_v41 = vld [vmem:[%s2791_s5 + $0x38] sm:$0xff] }
 0x25f   :  { %v2749_v32 = vpop.permute.xlu1 %1373 }
 0x262   :  { %v1057_v23 = vpop.f32.mrf.mxu2 }
 0x263   :  { %v1058_v6 = vadd.f32 %v1057_v23, %v1009_v2  ;;  %v2754_v30 = vpop.permute.xlu0 %1383 }
 0x265   :  { %v1084_v33 = vmax.f32 %v1058_v6, 0.0 }
 0x267   :  { %v1111_v14 = vpack.c.bf16 %v1084_v33, %v1083_v42 }
 0x26a   :  { %v1060_v48 = vpop.f32.mrf.mxu2 }
 0x26b   :  { %v1061_v31 = vadd.f32 %v1060_v48, %v1012_v10  ;;  %v2758_v48 = vpop.permute.xlu1 %1388  ;;  %v2760_v49 = vpop.permute.xlu0 %1398 }
 0x26d   :  { %v1085_v12 = vmax.f32 %v1061_v31, 0.0 }
 0x272   :  { %v1062_v38 = vpop.f32.mrf.mxu2 }
 0x273   :  { %v1063_v36 = vadd.f32 %v1062_v38, %v1014_v24  ;;  %v2764_v34 = vpop.permute.xlu1 %1403  ;;  %v2766_v40 = vpop.permute.xlu0 %1413 }
 0x275   :  { %v1086_v22 = vmax.f32 %v1063_v36, 0.0 }
 0x277   :  { %v1112_v28 = vpack.c.bf16 %v1086_v22, %v1085_v12 }
 0x27a   :  { %v1065_v60 = vpop.f32.mrf.mxu2 }
 0x27b   :  { %v1066_v55 = vadd.f32 %v1065_v60, %v1017_v46  ;;  %v2770_v46 = vpop.permute.xlu1 %1418 }
 0x27d   :  { %v1087_v53 = vmax.f32 %v1066_v55, 0.0 }
 0x282   :  { %v1067_v21 = vpop.f32.mrf.mxu2 }
 0x283   :  { %v1068_v29 = vadd.f32 %v1067_v21, %v1019_v13  ;;  %v1482_v2 = vpop.permute.xlu1 %1481 }
 0x285   :  { %v1088_v52 = vmax.f32 %v1068_v29, 0.0 }
 0x287   :  { %v1113_v16 = vpack.c.bf16 %v1088_v52, %v1087_v53 }
 0x28a   :  { %v1070_v15 = vpop.f32.mrf.mxu2 }
 0x28b   :  { %v1071_v3 = vadd.f32 %v1070_v15, %v1022_v17 }
 0x28d   :  { %v1089_v57 = vmax.f32 %v1071_v3, 0.0 }
 0x292   :  { %v1072_v27 = vpop.f32.mrf.mxu2 }
 0x293   :  { %v1073_v35 = vadd.f32 %v1072_v27, %v1024_v63 }
 0x295   :  { %v1090_v44 = vmax.f32 %v1073_v35, 0.0  ;;  %v1477_v35 = vpop.permute.xlu0 %1476 }
 0x297   :  { %v1114_v25 = vpack.c.bf16 %v1090_v44, %v1089_v57 }
 0x299   :  { %1276 = vmatpush.bf16.msra.mxu1 %v1114_v25 }
 0x29d   :  { %1277 = vmatpush.bf16.msra.mxu1 %v1113_v16 }
 0x2a1   :  { %1278 = vmatpush.bf16.msra.mxu1 %v1112_v28 }
 0x2a5   :  { %1279 = vmatpush.bf16.msra.mxu1 %v1111_v14 }
 0x2a9   :  { %1280 = vmatpush.bf16.msra.mxu1 %v1110_v20  ;;  %v1364_v20 = vpop.permute.xlu2 %1363 }
 0x2ad   :  { %1281 = vmatpush.bf16.msra.mxu1 %v2690_v8  ;;  %v1918_v8 = vld [vmem:[%s2792_s6 + $0x30] sm:$0xff] }
 0x2b0   :  { %v1193_v47 = vpop.f32.mrf.mxu3 }
 0x2b1   :  { %1282 = vmatpush.bf16.msra.mxu1 %v2688_v18  ;;  %v1916_v18 = vld [vmem:[%s2792_s6 + $0x20] sm:$0xff]  ;;  %v2756_v23 = vpop.permute.xlu2 %1378 }
 0x2b2   :  { %1207 = vmatmul.bf16.gmra.mxu3 %v1916_v18  ;;  %v1492_v18 = vpop.permute.xlu0 %1491 }
 0x2b5   :  { %1283 = vmatpush.bf16.msra.mxu1 %v2686_v54  ;;  %v1906_v54 = vld [vmem:[%s2791_s5 + $0x10] sm:$0xff]  ;;  %s1964_s5 = smov [#allocation3]  }
 0x2b6   :  { %s1600_s16 = sshll.u32 %s1964_s5, 4  ;;  %s1601_s16 = int_to_ptr.vmem [resolvable:$true] %s1600_s16 }
 0x2b8   :  { %1284 = vmatmul.bf16.vlgmr.msra.gmra.mxu1 %v1904_v26  ;;  %v1195_v60 = vpop.f32.mrf.mxu3 }
 0x2b9   :  { %v2762_v38 = vpop.permute.xlu2 %1393 }
 0x2c1   :  { %v2768_v15 = vpop.permute.xlu2 %1408 }
 0x2c2   :  { %1212 = vmatmul.bf16.gmra.mxu3 %v1917_v62 }
 0x2c7   :  { %v1198_v63 = vpop.f32.mrf.mxu3 }
 0x2c8   :  { %1289 = vmatmul.bf16.gmra.mxu1 %v1905_v5 }
 0x2c9   :  { %v1472_v24 = vpop.permute.xlu2 %1471 }
 0x2cf   :  { %v1200_v25 = vpop.f32.mrf.mxu3 }
 0x2d1   :  { %v1487_v33 = vpop.permute.xlu2 %1486 }
 0x2d2   :  { %1217 = vmatmul.bf16.gmra.mxu3 %v1918_v8 }
 0x2d7   :  { %v1203_v28 = vpop.f32.mrf.mxu3 }
 0x2d8   :  { %1294 = vmatmul.bf16.gmra.mxu1 %v1906_v54 }
 0x2e2   :  { %1222 = vmatmul.bf16.gmra.mxu3 %v1919_v45 }
 0x2e8   :  { %1299 = vmatmul.bf16.gmra.mxu1 %v1907_v43  ;;  %v1205_v43 = vpop.f32.mrf.mxu3 }
 0x2f8   :  { %1304 = vmatmul.bf16.gmra.mxu1 %v1908_v51 }
 0x308   :  { %1309 = vmatmul.bf16.gmra.mxu1 %v1909_v1 }
 0x318   :  { %1314 = vmatmul.bf16.gmra.mxu1 %v1910_v11 }
 0x328   :  { %1319 = vmatmul.bf16.gmra.mxu1 %v1911_v41 }
 0x335   :  { %v1285_v58 = vpop.f32.mrf.mxu1  ;;  %v1208_v45 = vpop.f32.mrf.mxu3 }
 0x336   :  { %v1286_v21 = vadd.f32 %v1285_v58, %v1188_v9 }
 0x338   :  { %v1421_v37 = vadd.f32 %v1344_v19, %v1286_v21 }
 0x33a   :  { %v1437_v3 = vmax.f32 %v1421_v37, 0.0 }
 0x33c   :  { %v1549_v55 = vmul.f32 %v1472_v24, %v1437_v3 }
 0x33d   :  { %v1287_v17 = vpop.f32.mrf.mxu1  ;;  %v1210_v19 = vpop.f32.mrf.mxu3 }
 0x33e   :  { %v1288_v13 = vadd.f32 %v1287_v17, %v1190_v61 }
 0x340   :  { %v1422_v27 = vadd.f32 %v1349_v4, %v1288_v13 }
 0x342   :  { %v1438_v29 = vmax.f32 %v1422_v27, 0.0 }
 0x344   :  { %v1550_v57 = vmul.f32 %v1477_v35, %v1438_v29 }
 0x345   :  { %v1290_v44 = vpop.f32.mrf.mxu1  ;;  %v1213_v4 = vpop.f32.mrf.mxu3 }
 0x346   :  { %v1565_v10 = vadd.f32 %v1550_v57, %v1549_v55  ;;  %v1291_v36 = vadd.f32 %v1290_v44, %v1193_v47  ;;  %v1497_v47 = vpop.permute.xlu1 %1496 }
 0x348   :  { %v1423_v52 = vadd.f32 %v1354_v56, %v1291_v36 }
 0x34a   :  { %v1439_v0 = vmax.f32 %v1423_v52, 0.0 }
 0x34c   :  { %v1551_v31 = vmul.f32 %v1482_v2, %v1439_v0 }
 0x34d   :  { %v1292_v53 = vpop.f32.mrf.mxu1 }
 0x34e   :  { %v1566_v6 = vadd.f32 %v1565_v10, %v1551_v31  ;;  %v1293_v22 = vadd.f32 %v1292_v53, %v1195_v60  ;;  %v1502_v60 = vpop.permute.xlu2 %1501  ;;  %v1512_v55 = vpop.permute.xlu1 %1511 }
 0x350   :  { %v1424_v16 = vadd.f32 %v1359_v39, %v1293_v22  ;;  %v1215_v39 = vpop.f32.mrf.mxu3 }
 0x352   :  { %v1440_v12 = vmax.f32 %v1424_v16, 0.0 }
 0x354   :  { %v1552_v42 = vmul.f32 %v1487_v33, %v1440_v12 }
 0x355   :  { %v1295_v14 = vpop.f32.mrf.mxu1 }
 0x356   :  { %v1567_v50 = vadd.f32 %v1566_v6, %v1552_v42  ;;  %v1296_v26 = vadd.f32 %v1295_v14, %v1198_v63  ;;  %v1507_v63 = vpop.permute.xlu0 %1506  ;;  %v1517_v2 = vpop.permute.xlu2 %1516 }
 0x358   :  { %v1425_v7 = vadd.f32 %v1364_v20, %v1296_v26  ;;  %v1218_v41 = vpop.f32.mrf.mxu3  ;;  %v1527_v26 = vpop.permute.xlu1 %1526 }
 0x35a   :  { %v1441_v5 = vmax.f32 %v1425_v7, 0.0 }
 0x35c   :  { %v1553_v54 = vmul.f32 %v1492_v18, %v1441_v5 }
 0x35d   :  { %v1297_v62 = vpop.f32.mrf.mxu1 }
 0x35e   :  { %v1568_v8 = vadd.f32 %v1567_v50, %v1553_v54  ;;  %v1298_v58 = vadd.f32 %v1297_v62, %v1200_v25  ;;  %v1522_v16 = vpop.permute.xlu0 %1521 }
 0x360   :  { %v1426_v21 = vadd.f32 %v2747_v59, %v1298_v58  ;;  %v1220_v35 = vpop.f32.mrf.mxu3 }
 0x362   :  { %v1442_v27 = vmax.f32 %v1426_v21, 0.0 }
 0x364   :  { %v1554_v36 = vmul.f32 %v1497_v47, %v1442_v27 }
 0x365   :  { %v1300_v51 = vpop.f32.mrf.mxu1 }
 0x366   :  { %v1301_v20 = vadd.f32 %v1300_v51, %v1203_v28 }
 0x368   :  { %v1427_v13 = vadd.f32 %v2749_v32, %v1301_v20  ;;  %v1223_v42 = vpop.f32.mrf.mxu3 }
 0x36a   :  { %v1443_v57 = vmax.f32 %v1427_v13, 0.0 }
 0x36c   :  { %v1555_v32 = vmul.f32 %v1502_v60, %v1443_v57 }
 0x36d   :  { %v1302_v1 = vpop.f32.mrf.mxu1 }
 0x36e   :  { %v1303_v37 = vadd.f32 %v1302_v1, %v1205_v43 }
 0x370   :  { %v1428_v29 = vadd.f32 %v2756_v23, %v1303_v37  ;;  %v1569_v23 = vadd.f32 %v1568_v8, %v1554_v36 }
 0x372   :  { %v1444_v52 = vmax.f32 %v1428_v29, 0.0  ;;  %v1570_v28 = vadd.f32 %v1569_v23, %v1555_v32 }
 0x374   :  { %v1556_v22 = vmul.f32 %v1507_v63, %v1444_v52 }
 0x375   :  { %v1305_v56 = vpop.f32.mrf.mxu1 }
 0x376   :  { %v1306_v3 = vadd.f32 %v1305_v56, %v1208_v45  ;;  %v1571_v7 = vadd.f32 %v1570_v28, %v1556_v22  ;;  %v1532_v45 = vpop.permute.xlu2 %1531 }
 0x378   :  { %v1429_v44 = vadd.f32 %v2754_v30, %v1306_v3 }
 0x37a   :  { %v1445_v31 = vmax.f32 %v1429_v44, 0.0 }
 0x37c   :  { %v1557_v14 = vmul.f32 %v1512_v55, %v1445_v31 }
 0x37d   :  { %v1307_v11 = vpop.f32.mrf.mxu1 }
 0x37e   :  { %v1308_v24 = vadd.f32 %v1307_v11, %v1210_v19  ;;  %v1572_v43 = vadd.f32 %v1571_v7, %v1557_v14 }
 0x380   :  { %v1430_v59 = vadd.f32 %v2758_v48, %v1308_v24 }
 0x382   :  { %v1446_v12 = vmax.f32 %v1430_v59, 0.0 }
 0x384   :  { %v1558_v18 = vmul.f32 %v1517_v2, %v1446_v12 }
 0x385   :  { %v1310_v9 = vpop.f32.mrf.mxu1 }
 0x386   :  { %v1311_v10 = vadd.f32 %v1310_v9, %v1213_v4  ;;  %v1573_v1 = vadd.f32 %v1572_v43, %v1558_v18  ;;  %v1537_v4 = vpop.permute.xlu0 %1536 }
 0x388   :  { %v1431_v53 = vadd.f32 %v2762_v38, %v1311_v10 }
 0x38a   :  { %v1447_v50 = vmax.f32 %v1431_v53, 0.0 }
 0x38c   :  { %v1559_v8 = vmul.f32 %v1522_v16, %v1447_v50 }
 0x38d   :  { %v1312_v61 = vpop.f32.mrf.mxu1 }
 0x38e   :  { %v1313_v0 = vadd.f32 %v1312_v61, %v1215_v39  ;;  %v1574_v11 = vadd.f32 %v1573_v1, %v1559_v8  ;;  %v1225_v39 = vpop.f32.mrf.mxu3  ;;  %v1590_v55 = vpop.permute.xlu0 %1589 }
 0x38f   :  { %v1592_v44 = vperm.slane %v1590_v55, 0 }
 0x390   :  { %v1432_v33 = vadd.f32 %v2760_v49, %v1313_v0 }
 0x392   :  { %v1448_v54 = vmax.f32 %v1432_v33, 0.0 }
 0x394   :  { %v1560_v19 = vmul.f32 %v1527_v26, %v1448_v54 }
 0x395   :  { %v1315_v17 = vpop.f32.mrf.mxu1 }
 0x396   :  { %v1316_v6 = vadd.f32 %v1315_v17, %v1218_v41  ;;  %v1575_v41 = vadd.f32 %v1574_v11, %v1560_v19  ;;  %v1547_v17 = vpop.permute.xlu2 %1546 }
 0x398   :  { %v1433_v48 = vadd.f32 %v2764_v34, %v1316_v6 }
 0x39a   :  { %v1449_v51 = vmax.f32 %v1433_v48, 0.0 }
 0x39c   :  { %v1561_v34 = vmul.f32 %v1532_v45, %v1449_v51 }
 0x39d   :  { %v1317_v25 = vpop.f32.mrf.mxu1 }
 0x39e   :  { %v1318_v30 = vadd.f32 %v1317_v25, %v1220_v35  ;;  %v1576_v20 = vadd.f32 %v1575_v41, %v1561_v34 }
 0x3a0   :  { %v1434_v38 = vadd.f32 %v2768_v15, %v1318_v30  ;;  %v1542_v15 = vpop.permute.xlu1 %1541 }
 0x3a2   :  { %v1450_v56 = vmax.f32 %v1434_v38, 0.0 }
 0x3a4   :  { %v1562_v47 = vmul.f32 %v1537_v4, %v1450_v56 }
 0x3a5   :  { %v1320_v5 = vpop.f32.mrf.mxu1 }
 0x3a6   :  { %v1321_v62 = vadd.f32 %v1320_v5, %v1223_v42  ;;  %v1577_v37 = vadd.f32 %v1576_v20, %v1562_v47 }
 0x3a8   :  { %v1435_v49 = vadd.f32 %v2766_v40, %v1321_v62 }
 0x3aa   :  { %v1451_v9 = vmax.f32 %v1435_v49, 0.0 }
 0x3ac   :  { %v1563_v60 = vmul.f32 %v1542_v15, %v1451_v9 }
 0x3ad   :  { %v1322_v61 = vpop.f32.mrf.mxu1 }
 0x3ae   :  { %v1323_v58 = vadd.f32 %v1322_v61, %v1225_v39  ;;  %v1578_v13 = vadd.f32 %v1577_v37, %v1563_v60 }
 0x3b0   :  { %v1436_v21 = vadd.f32 %v2770_v46, %v1323_v58 }
 0x3b2   :  { %v1452_v40 = vmax.f32 %v1436_v21, 0.0 }
 0x3b4   :  { %v1564_v63 = vmul.f32 %v1547_v17, %v1452_v40 }
 0x3b6   :  { %v1579_v3 = vadd.f32 %v1578_v13, %v1564_v63 }
 0x3b8   :  { %v1580_v27 = vrot.slane %v1579_v3, 4 }
 0x3ba   :  { %v1581_v29 = vadd.f32 %v1580_v27, %v1579_v3 }
 0x3bc   :  { %v1582_v35 = vrot.slane %v1581_v29, 2 }
 0x3be   :  { %v1583_v24 = vadd.f32 %v1582_v35, %v1581_v29 }
 0x3c0   :  { %v1584_v57 = vrot.slane %v1583_v24, 1 }
 0x3c2   :  { %v1585_v46 = vadd.f32 %v1584_v57, %v1583_v24 }
 0x3c4   :  { %v1593_v10 = vadd.f32 %v1592_v44, %v1585_v46 }
 0x3c6   :  { %1594 = vst [vmem:[#allocation3] sm:$0x1] %v1593_v10 }
 0x3c7   :  { %1605 = dma.vmem_to_hbm [thread:$0]  %s1601_s16, 16, %s1603_s19, [#allocation4]  }
 0x3c8   :  { %1961 = dma.done.wait [#allocation4], 16  }
 0x3c9   :  { %1962 = vsyncadd [#allocation4], 4294967280 }
 0x3ca   :  { %1610 = vsyncpa [#allocation4], 1 }

</bundles_post_ra>
